<compile_context>
chip_gen: v6e
topology: v6e:2x2x1
jax: 0.10.0
libtpu: 0.0.40
codegen_flags: <defaults>
</compile_context>

<pallas_src>
import jax
import jax.numpy as jnp
from jax.experimental import pallas as pl
from jax.experimental.pallas import tpu as pltpu


# ---------------------------------------------------------------------------
# Kernel
# ---------------------------------------------------------------------------
def _lstm_unit_kernel(x_ref, wih_ref, whh_ref, bias_ref, out_ref,
                      gx_scr, h_scr, c_scr):
    """One (batch-tile, time-chunk) grid cell of the fused LSTM unit.

    x_ref   : (Tc*Bt, D)   f32   input rows (time-major, Bt batch rows / step)
    wih_ref : (D, 4H)      f32   W_ih^T, resident (gate order i, f, g, o)
    whh_ref : (H, 4H)      bf16  W_hh^T, resident
    bias_ref: (1, 4H)      f32   b_ih + b_hh
    out_ref : (Tc*Bt, H)   f32   hidden-state outputs
    gx_scr  : (Tc*Bt, 4H)  f32   this chunk's input projection (VMEM scratch)
    h_scr, c_scr : (Bt, H) f32   state carried across time chunks
    """
    rows = x_ref.shape[0]
    h_dim = whh_ref.shape[0]
    bt = h_scr.shape[0]
    tc = rows // bt

    # Whole-chunk input projection: one dense MXU matmul, off the serial path,
    # result kept in VMEM (never round-tripped through HBM).
    gx_scr[...] = jnp.dot(x_ref[...], wih_ref[...],
                          preferred_element_type=jnp.float32) + bias_ref[...]

    # module.hidden_state is None -> zero (h0, c0) at the first time chunk of
    # each batch tile.
    @pl.when(pl.program_id(1) == 0)
    def _():
        h_scr[...] = jnp.zeros_like(h_scr)
        c_scr[...] = jnp.zeros_like(c_scr)

    whh = whh_ref[...]                       # (H, 4H) bf16, hoisted out of loop

    def step(t, carry):
        h_prev, c_prev = carry               # register-carried state (no VMEM)
        gx = gx_scr[pl.ds(t * bt, bt), :]    # one contiguous (Bt, 4H) load
        # Single fused recurrent matmul: bf16 operands, f32 accumulation.
        gates = gx + jnp.dot(h_prev.astype(jnp.bfloat16), whh,
                             preferred_element_type=jnp.float32)
        # Gate split is a static lane slice (lane-aligned when H % 128 == 0).
        i_g = jax.nn.sigmoid(gates[:, 0 * h_dim:1 * h_dim])
        f_g = jax.nn.sigmoid(gates[:, 1 * h_dim:2 * h_dim])
        g_g = jnp.tanh(gates[:, 2 * h_dim:3 * h_dim])
        o_g = jax.nn.sigmoid(gates[:, 3 * h_dim:4 * h_dim])
        c_t = f_g * c_prev + i_g * g_g
        h_t = o_g * jnp.tanh(c_t)
        out_ref[pl.ds(t * bt, bt), :] = h_t
        return (h_t, c_t)

    h_fin, c_fin = jax.lax.fori_loop(0, tc, step, (h_scr[...], c_scr[...]),
                                     unroll=8)
    # Cross-chunk carry: one scratch write per chunk instead of per step.
    h_scr[...] = h_fin
    c_scr[...] = c_fin


# ---------------------------------------------------------------------------
# Wrapper
# ---------------------------------------------------------------------------
def _round_up(v, m):
    return (v + m - 1) // m * m


def _pick_time_chunk(T, bt, D, H, vmem_budget_bytes):
    """Largest time chunk (multiple of 8, <= 512) whose VMEM footprint fits."""
    def pad2(rows, cols, itemsize=4):
        return _round_up(rows, 8) * _round_up(cols, 128) * itemsize

    def vmem_bytes(tc):
        rows = tc * bt
        return (2 * pad2(rows, D)           # x block, double-buffered
                + 2 * pad2(rows, H)         # out block, double-buffered
                + pad2(rows, 4 * H)         # gx scratch
                + 2 * pad2(D, 4 * H)        # resident W_ih (2 pipeline bufs)
                + 2 * pad2(H, 4 * H, 2)     # resident W_hh (bf16)
                + 2 * pad2(1, 4 * H)        # bias
                + 2 * pad2(bt, H))          # h / c carry scratch

    tc = min(_round_up(T, 8), 512)
    while tc > 8 and vmem_bytes(tc) > vmem_budget_bytes:
        tc = max(8, _round_up(tc // 2, 8))
    return tc


def _lstm_hidden_seq(x, w_ih, w_hh, b_ih, b_hh, *,
                     time_chunk=None, batch_tile=None,
                     vmem_budget_bytes=32 * 1024 * 1024):
    """Hidden sequence of a 1-layer LSTM(D -> H) with zero initial state.

    x: (T, B, D) float32.  Returns (T, B, H) float32.
    On v7x: pass batch_tile=B//2 to use both TensorCores and keep
    vmem_budget_bytes within the 64 MiB per-core VMEM.
    """
    T, B, D = x.shape
    H = w_hh.shape[1]

    bt = B if batch_tile is None else batch_tile
    assert B % bt == 0, "batch_tile must divide batch"
    nb = B // bt

    tc = (time_chunk if time_chunk is not None
          else _pick_time_chunk(T, bt, D, H, vmem_budget_bytes))
    tc = max(8, _round_up(tc, 8))
    T_pad = pl.cdiv(T, tc) * tc
    nc = T_pad // tc
    rows_per_block = tc * bt

    x32 = x.astype(jnp.float32)
    if T_pad != T:
        # Zero-padded trailing steps only affect the (discarded) final state.
        x32 = jnp.pad(x32, ((0, T_pad - T), (0, 0), (0, 0)))

    # Rows layout: per batch-tile, time-major blocks of Bt batch rows.
    # For nb == 1 this is a pure (free) reshape.
    x_rows = (x32.reshape(T_pad, nb, bt, D)
                 .transpose(1, 0, 2, 3)
                 .reshape(nb * T_pad * bt, D))

    # PyTorch packs W_* rows as [i; f; g; o]; transposing gives (in_dim, 4H)
    # with gates along lanes (one wide matmul, lane-aligned gate split).
    wih_t = w_ih.astype(jnp.float32).T                      # (D, 4H) f32
    whh_t = w_hh.astype(jnp.float32).T.astype(jnp.bfloat16)  # (H, 4H) bf16
    bias = (b_ih + b_hh).astype(jnp.float32).reshape(1, 4 * H)

    # NOTE: pl.Buffered(1) on the resident-weight specs would save one buffer
    # on v7x's 64 MiB VMEM; omitted here to stay conservative across versions.
    h_rows = pl.pallas_call(
        _lstm_unit_kernel,
        out_shape=jax.ShapeDtypeStruct((nb * T_pad * bt, H), jnp.float32),
        grid=(nb, nc),
        in_specs=[
            pl.BlockSpec((rows_per_block, D), lambda b, c: (b * nc + c, 0)),
            pl.BlockSpec((D, 4 * H), lambda b, c: (0, 0)),   # W_ih^T resident
            pl.BlockSpec((H, 4 * H), lambda b, c: (0, 0)),   # W_hh^T resident
            pl.BlockSpec((1, 4 * H), lambda b, c: (0, 0)),   # bias resident
        ],
        out_specs=pl.BlockSpec((rows_per_block, H), lambda b, c: (b * nc + c, 0)),
        scratch_shapes=[
            pltpu.VMEM((rows_per_block, 4 * H), jnp.float32),  # gx (chunk)
            pltpu.VMEM((bt, H), jnp.float32),                  # h carry
            pltpu.VMEM((bt, H), jnp.float32),                  # c carry
        ],
        compiler_params=pltpu.CompilerParams(
            dimension_semantics=("parallel", "arbitrary"),
            vmem_limit_bytes=vmem_budget_bytes),
    )(x_rows, wih_t, whh_t, bias)

    h_seq = (h_rows.reshape(nb, T_pad, bt, H)
                   .transpose(1, 0, 2, 3)
                   .reshape(T_pad, B, H))[:T]
    return h_seq


def basic_unit_forward(x, w_ih, w_hh, b_ih, b_hh, *, droprate=0.0, **kw):
    """BasicUnit('lstm', D, H, droprate).forward(x), eval-mode semantics."""
    # TODO(synk): training-mode F.dropout (droprate>0, RNG-dependent) not
    # reproduced; identity (eval mode) semantics are used here.
    del droprate
    h = _lstm_hidden_seq(x, w_ih, w_hh, b_ih, b_hh, **kw)
    return jnp.concatenate([x, h.astype(x.dtype)], axis=2)


def dense_rnn_forward(x, layer_params, *, droprate=0.0, **kw):
    """DenseRNN.forward: sequential BasicUnits; layer i has input dim E + i*H.

    The final (T, B, E + L*H) slab is preallocated once; each layer writes only
    its own H-wide channel block (avoids O(L^2) re-concatenation traffic).
    """
    del droprate  # eval-mode semantics (identity dropout)
    T, B, E = x.shape
    H = layer_params[0][1].shape[1]
    L = len(layer_params)
    slab = jnp.zeros((T, B, E + L * H), x.dtype)
    slab = slab.at[:, :, :E].set(x)
    d = E
    for (w_ih, w_hh, b_ih, b_hh) in layer_params:
        h = _lstm_hidden_seq(slab[:, :, :d], w_ih, w_hh, b_ih, b_hh, **kw)
        slab = slab.at[:, :, d:d + H].set(h.astype(x.dtype))
        d += H
    return slab


# ---------------------------------------------------------------------------
# Pure-JAX reference (matches torch.nn.LSTM 1-layer + cat), for validation.
# ---------------------------------------------------------------------------
def _lstm_unit_reference(x, w_ih, w_hh, b_ih, b_hh):
    T, B, D = x.shape
    H = w_hh.shape[1]
    h = jnp.zeros((B, H), jnp.float32)
    c = jnp.zeros((B, H), jnp.float32)
    outs = []
    for t in range(T):
        gates = x[t] @ w_ih.T + b_ih + h @ w_hh.T + b_hh
        i_g = jax.nn.sigmoid(gates[:, 0 * H:1 * H])
        f_g = jax.nn.sigmoid(gates[:, 1 * H:2 * H])
        g_g = jnp.tanh(gates[:, 2 * H:3 * H])
        o_g = jax.nn.sigmoid(gates[:, 3 * H:4 * H])
        c = f_g * c + i_g * g_g
        h = o_g * jnp.tanh(c)
        outs.append(h)
    return jnp.concatenate([x, jnp.stack(outs, axis=0)], axis=2)


def _dense_rnn_reference(x, layer_params):
    out = x
    for p in layer_params:
        out = _lstm_unit_reference(out, *p)
    return out


if __name__ == "__main__":
    # DenseRNN(layer_num=2, unit='lstm', emb_dim=32, hid_dim=16):
    #   layer 0: 32 -> 48, layer 1: 48 -> 64.   seq=8, batch=2.
    T, B, E, Hd, L = 8, 2, 32, 16, 2

    key = jax.random.PRNGKey(0)
    kx, key = jax.random.split(key)
    x = jax.random.normal(kx, (T, B, E), jnp.float32)

    bound = 1.0 / (Hd ** 0.5)   # PyTorch nn.LSTM default init range
    layer_params = []
    D = E
    for _ in range(L):
        k1, k2, k3, k4, key = jax.random.split(key, 5)
        w_ih = jax.random.uniform(k1, (4 * Hd, D), jnp.float32, -bound, bound)
        w_hh = jax.random.uniform(k2, (4 * Hd, Hd), jnp.float32, -bound, bound)
        b_ih = jax.random.uniform(k3, (4 * Hd,), jnp.float32, -bound, bound)
        b_hh = jax.random.uniform(k4, (4 * Hd,), jnp.float32, -bound, bound)
        layer_params.append((w_ih, w_hh, b_ih, b_hh))
        D += Hd

    fwd = jax.jit(dense_rnn_forward)
    out = jax.block_until_ready(fwd(x, layer_params))

    ref = _dense_rnn_reference(x, layer_params)
    assert out.shape == (T, B, E + L * Hd), out.shape
    max_err = float(jnp.max(jnp.abs(out - ref)))
    # Tolerance loosened vs. the pure-f32 variant: the recurrent matmul uses
    # bf16 operands (f32 accumulation) per the performance review.
    assert jnp.allclose(out, ref, atol=5e-2, rtol=5e-2), (
        f"mismatch, max_err={max_err}")

    print("KERNEL_OK")
</pallas_src>

<mosaic_0001>
module attributes {stable_mosaic.version = 11 : i64} {
  func.func @_lstm_unit_kernel(%arg0: i32, %arg1: i32, %arg2: memref<16x32xf32, #tpu.memory_space<vmem>>, %arg3: memref<32x64xf32, #tpu.memory_space<vmem>>, %arg4: memref<16x64xbf16, #tpu.memory_space<vmem>>, %arg5: memref<1x64xf32, #tpu.memory_space<vmem>>, %arg6: memref<16x16xf32, #tpu.memory_space<vmem>>, %arg7: memref<16x64xf32, #tpu.memory_space<vmem>>, %arg8: memref<2x16xf32, #tpu.memory_space<vmem>>, %arg9: memref<2x16xf32, #tpu.memory_space<vmem>>) attributes {dimension_semantics = [#tpu.dimension_semantics<parallel>, #tpu.dimension_semantics<arbitrary>], iteration_bounds = array<i64: 1, 1>, scalar_prefetch = 0 : i64, scratch_operands = 3 : i64, tpu.core_type = #tpu.core_type<tc>, window_params = [{transform_indices = @transform_0, window_bounds = array<i64: 16, 32>}, {pipeline_mode = #tpu.pipeline_mode<synchronous>, transform_indices = @transform_1, window_bounds = array<i64: 32, 64>}, {pipeline_mode = #tpu.pipeline_mode<synchronous>, transform_indices = @transform_2, window_bounds = array<i64: 16, 64>}, {pipeline_mode = #tpu.pipeline_mode<synchronous>, transform_indices = @transform_3, window_bounds = array<i64: 1, 64>}, {transform_indices = @transform_4, window_bounds = array<i64: 16, 16>}]} {
    %c0 = arith.constant 0 : index
    %c0_0 = arith.constant 0 : index
    %0 = vector.load %arg2[%c0, %c0_0] : memref<16x32xf32, #tpu.memory_space<vmem>>, vector<16x32xf32>
    %c0_1 = arith.constant 0 : index
    %c0_2 = arith.constant 0 : index
    %1 = vector.load %arg3[%c0_1, %c0_2] : memref<32x64xf32, #tpu.memory_space<vmem>>, vector<32x64xf32>
    %cst = arith.constant dense<0.000000e+00> : vector<16x64xf32>
    %2 = tpu.matmul %0, %1, %cst {dimension_numbers = #tpu.dot_dimension_numbers<[1], [0], [0], [1], [0, 0, 1, 1], [], []>} : vector<16x32xf32>, vector<32x64xf32>, vector<16x64xf32> -> vector<16x64xf32>
    %c0_3 = arith.constant 0 : index
    %c0_4 = arith.constant 0 : index
    %3 = vector.load %arg5[%c0_3, %c0_4] : memref<1x64xf32, #tpu.memory_space<vmem>>, vector<1x64xf32>
    %4 = vector.broadcast %3 : vector<1x64xf32> to vector<16x64xf32>
    %5 = arith.addf %2, %4 : vector<16x64xf32>
    %c0_5 = arith.constant 0 : index
    %c0_6 = arith.constant 0 : index
    %6 = vector.load %arg7[%c0_5, %c0_6] : memref<16x64xf32, #tpu.memory_space<vmem>>, vector<16x64xf32>
    tpu.vector_store %arg7[%c0_5, %c0_6], %5 {strides = array<i32>} : memref<16x64xf32, #tpu.memory_space<vmem>>, vector<16x64xf32>,
    %c0_i32 = arith.constant 0 : i32
    %7 = arith.cmpi eq, %arg1, %c0_i32 : i32
    %8 = arith.extui %7 : i1 to i32
    %c0_i32_7 = arith.constant 0 : i32
    %9 = arith.cmpi ne, %8, %c0_i32_7 : i32
    scf.if %9 {
      %cst_83 = arith.constant 0.000000e+00 : f32
      %287 = vector.broadcast %cst_83 : f32 to vector<2x16xf32>
      %c0_84 = arith.constant 0 : index
      %c0_85 = arith.constant 0 : index
      %288 = vector.load %arg8[%c0_84, %c0_85] : memref<2x16xf32, #tpu.memory_space<vmem>>, vector<2x16xf32>
      tpu.vector_store %arg8[%c0_84, %c0_85], %287 {strides = array<i32>} : memref<2x16xf32, #tpu.memory_space<vmem>>, vector<2x16xf32>,
      %cst_86 = arith.constant 0.000000e+00 : f32
      %289 = vector.broadcast %cst_86 : f32 to vector<2x16xf32>
      %c0_87 = arith.constant 0 : index
      %c0_88 = arith.constant 0 : index
      %290 = vector.load %arg9[%c0_87, %c0_88] : memref<2x16xf32, #tpu.memory_space<vmem>>, vector<2x16xf32>
      tpu.vector_store %arg9[%c0_87, %c0_88], %289 {strides = array<i32>} : memref<2x16xf32, #tpu.memory_space<vmem>>, vector<2x16xf32>,
    } else {
    }
    %c0_8 = arith.constant 0 : index
    %c0_9 = arith.constant 0 : index
    %10 = vector.load %arg4[%c0_8, %c0_9] : memref<16x64xbf16, #tpu.memory_space<vmem>>, vector<16x64xbf16>
    %c0_10 = arith.constant 0 : index
    %c0_11 = arith.constant 0 : index
    %11 = vector.load %arg8[%c0_10, %c0_11] : memref<2x16xf32, #tpu.memory_space<vmem>>, vector<2x16xf32>
    %c0_12 = arith.constant 0 : index
    %c0_13 = arith.constant 0 : index
    %12 = vector.load %arg9[%c0_12, %c0_13] : memref<2x16xf32, #tpu.memory_space<vmem>>, vector<2x16xf32>
    %c0_i32_14 = arith.constant 0 : i32
    %c2_i32 = arith.constant 2 : i32
    %13 = arith.muli %c0_i32_14, %c2_i32 : i32
    %14 = arith.index_cast %13 : i32 to index
    %c0_15 = arith.constant 0 : index
    %15 = vector.load %arg7[%14, %c0_15] : memref<16x64xf32, #tpu.memory_space<vmem>>, vector<2x64xf32>
    %16 = arith.truncf %11 : vector<2x16xf32> to vector<2x16xbf16>
    %cst_16 = arith.constant dense<0.000000e+00> : vector<2x64xf32>
    %17 = tpu.matmul %16, %10, %cst_16 {dimension_numbers = #tpu.dot_dimension_numbers<[1], [0], [0], [1], [0, 0, 1, 1], [], []>} : vector<2x16xbf16>, vector<16x64xbf16>, vector<2x64xf32> -> vector<2x64xf32>
    %18 = arith.addf %15, %17 : vector<2x64xf32>
    %19 = vector.extract_strided_slice %18 {offsets = [0, 0], sizes = [2, 16], strides = [1, 1]} : vector<2x64xf32> to vector<2x16xf32>
    %20 = arith.negf %19 : vector<2x16xf32>
    %21 = math.exp %20 : vector<2x16xf32>
    %cst_17 = arith.constant 1.000000e+00 : f32
    %22 = vector.broadcast %cst_17 : f32 to vector<2x16xf32>
    %23 = arith.addf %22, %21 : vector<2x16xf32>
    %24 = arith.divf %22, %23 : vector<2x16xf32>
    %25 = vector.extract_strided_slice %18 {offsets = [0, 16], sizes = [2, 16], strides = [1, 1]} : vector<2x64xf32> to vector<2x16xf32>
    %26 = arith.negf %25 : vector<2x16xf32>
    %27 = math.exp %26 : vector<2x16xf32>
    %cst_18 = arith.constant 1.000000e+00 : f32
    %28 = vector.broadcast %cst_18 : f32 to vector<2x16xf32>
    %29 = arith.addf %28, %27 : vector<2x16xf32>
    %30 = arith.divf %28, %29 : vector<2x16xf32>
    %31 = vector.extract_strided_slice %18 {offsets = [0, 32], sizes = [2, 16], strides = [1, 1]} : vector<2x64xf32> to vector<2x16xf32>
    %32 = math.tanh %31 : vector<2x16xf32>
    %33 = vector.extract_strided_slice %18 {offsets = [0, 48], sizes = [2, 16], strides = [1, 1]} : vector<2x64xf32> to vector<2x16xf32>
    %34 = arith.negf %33 : vector<2x16xf32>
    %35 = math.exp %34 : vector<2x16xf32>
    %cst_19 = arith.constant 1.000000e+00 : f32
    %36 = vector.broadcast %cst_19 : f32 to vector<2x16xf32>
    %37 = arith.addf %36, %35 : vector<2x16xf32>
    %38 = arith.divf %36, %37 : vector<2x16xf32>
    %39 = arith.mulf %30, %12 : vector<2x16xf32>
    %40 = arith.mulf %24, %32 : vector<2x16xf32>
    %41 = arith.addf %39, %40 : vector<2x16xf32>
    %42 = math.tanh %41 : vector<2x16xf32>
    %43 = arith.mulf %38, %42 : vector<2x16xf32>
    %c2_i32_20 = arith.constant 2 : i32
    %44 = arith.muli %c0_i32_14, %c2_i32_20 : i32
    %45 = arith.index_cast %44 : i32 to index
    %c0_21 = arith.constant 0 : index
    %46 = vector.load %arg6[%45, %c0_21] : memref<16x16xf32, #tpu.memory_space<vmem>>, vector<2x16xf32>
    tpu.vector_store %arg6[%45, %c0_21], %43 {strides = array<i32>} : memref<16x16xf32, #tpu.memory_space<vmem>>, vector<2x16xf32>,
    %c1_i32 = arith.constant 1 : i32
    %c2_i32_22 = arith.constant 2 : i32
    %47 = arith.muli %c1_i32, %c2_i32_22 : i32
    %48 = arith.index_cast %47 : i32 to index
    %c0_23 = arith.constant 0 : index
    %49 = vector.load %arg7[%48, %c0_23] : memref<16x64xf32, #tpu.memory_space<vmem>>, vector<2x64xf32>
    %50 = arith.truncf %43 : vector<2x16xf32> to vector<2x16xbf16>
    %cst_24 = arith.constant dense<0.000000e+00> : vector<2x64xf32>
    %51 = tpu.matmul %50, %10, %cst_24 {dimension_numbers = #tpu.dot_dimension_numbers<[1], [0], [0], [1], [0, 0, 1, 1], [], []>} : vector<2x16xbf16>, vector<16x64xbf16>, vector<2x64xf32> -> vector<2x64xf32>
    %52 = arith.addf %49, %51 : vector<2x64xf32>
    %53 = vector.extract_strided_slice %52 {offsets = [0, 0], sizes = [2, 16], strides = [1, 1]} : vector<2x64xf32> to vector<2x16xf32>
    %54 = arith.negf %53 : vector<2x16xf32>
    %55 = math.exp %54 : vector<2x16xf32>
    %cst_25 = arith.constant 1.000000e+00 : f32
    %56 = vector.broadcast %cst_25 : f32 to vector<2x16xf32>
    %57 = arith.addf %56, %55 : vector<2x16xf32>
    %58 = arith.divf %56, %57 : vector<2x16xf32>
    %59 = vector.extract_strided_slice %52 {offsets = [0, 16], sizes = [2, 16], strides = [1, 1]} : vector<2x64xf32> to vector<2x16xf32>
    %60 = arith.negf %59 : vector<2x16xf32>
    %61 = math.exp %60 : vector<2x16xf32>
    %cst_26 = arith.constant 1.000000e+00 : f32
    %62 = vector.broadcast %cst_26 : f32 to vector<2x16xf32>
    %63 = arith.addf %62, %61 : vector<2x16xf32>
    %64 = arith.divf %62, %63 : vector<2x16xf32>
    %65 = vector.extract_strided_slice %52 {offsets = [0, 32], sizes = [2, 16], strides = [1, 1]} : vector<2x64xf32> to vector<2x16xf32>
    %66 = math.tanh %65 : vector<2x16xf32>
    %67 = vector.extract_strided_slice %52 {offsets = [0, 48], sizes = [2, 16], strides = [1, 1]} : vector<2x64xf32> to vector<2x16xf32>
    %68 = arith.negf %67 : vector<2x16xf32>
    %69 = math.exp %68 : vector<2x16xf32>
    %cst_27 = arith.constant 1.000000e+00 : f32
    %70 = vector.broadcast %cst_27 : f32 to vector<2x16xf32>
    %71 = arith.addf %70, %69 : vector<2x16xf32>
    %72 = arith.divf %70, %71 : vector<2x16xf32>
    %73 = arith.mulf %64, %41 : vector<2x16xf32>
    %74 = arith.mulf %58, %66 : vector<2x16xf32>
    %75 = arith.addf %73, %74 : vector<2x16xf32>
    %76 = math.tanh %75 : vector<2x16xf32>
    %77 = arith.mulf %72, %76 : vector<2x16xf32>
    %c2_i32_28 = arith.constant 2 : i32
    %78 = arith.muli %c1_i32, %c2_i32_28 : i32
    %79 = arith.index_cast %78 : i32 to index
    %c0_29 = arith.constant 0 : index
    %80 = vector.load %arg6[%79, %c0_29] : memref<16x16xf32, #tpu.memory_space<vmem>>, vector<2x16xf32>
    tpu.vector_store %arg6[%79, %c0_29], %77 {strides = array<i32>} : memref<16x16xf32, #tpu.memory_space<vmem>>, vector<2x16xf32>,
    %c2_i32_30 = arith.constant 2 : i32
    %c2_i32_31 = arith.constant 2 : i32
    %81 = arith.muli %c2_i32_30, %c2_i32_31 : i32
    %82 = arith.index_cast %81 : i32 to index
    %c0_32 = arith.constant 0 : index
    %83 = vector.load %arg7[%82, %c0_32] : memref<16x64xf32, #tpu.memory_space<vmem>>, vector<2x64xf32>
    %84 = arith.truncf %77 : vector<2x16xf32> to vector<2x16xbf16>
    %cst_33 = arith.constant dense<0.000000e+00> : vector<2x64xf32>
    %85 = tpu.matmul %84, %10, %cst_33 {dimension_numbers = #tpu.dot_dimension_numbers<[1], [0], [0], [1], [0, 0, 1, 1], [], []>} : vector<2x16xbf16>, vector<16x64xbf16>, vector<2x64xf32> -> vector<2x64xf32>
    %86 = arith.addf %83, %85 : vector<2x64xf32>
    %87 = vector.extract_strided_slice %86 {offsets = [0, 0], sizes = [2, 16], strides = [1, 1]} : vector<2x64xf32> to vector<2x16xf32>
    %88 = arith.negf %87 : vector<2x16xf32>
    %89 = math.exp %88 : vector<2x16xf32>
    %cst_34 = arith.constant 1.000000e+00 : f32
    %90 = vector.broadcast %cst_34 : f32 to vector<2x16xf32>
    %91 = arith.addf %90, %89 : vector<2x16xf32>
    %92 = arith.divf %90, %91 : vector<2x16xf32>
    %93 = vector.extract_strided_slice %86 {offsets = [0, 16], sizes = [2, 16], strides = [1, 1]} : vector<2x64xf32> to vector<2x16xf32>
    %94 = arith.negf %93 : vector<2x16xf32>
    %95 = math.exp %94 : vector<2x16xf32>
    %cst_35 = arith.constant 1.000000e+00 : f32
    %96 = vector.broadcast %cst_35 : f32 to vector<2x16xf32>
    %97 = arith.addf %96, %95 : vector<2x16xf32>
    %98 = arith.divf %96, %97 : vector<2x16xf32>
    %99 = vector.extract_strided_slice %86 {offsets = [0, 32], sizes = [2, 16], strides = [1, 1]} : vector<2x64xf32> to vector<2x16xf32>
    %100 = math.tanh %99 : vector<2x16xf32>
    %101 = vector.extract_strided_slice %86 {offsets = [0, 48], sizes = [2, 16], strides = [1, 1]} : vector<2x64xf32> to vector<2x16xf32>
    %102 = arith.negf %101 : vector<2x16xf32>
    %103 = math.exp %102 : vector<2x16xf32>
    %cst_36 = arith.constant 1.000000e+00 : f32
    %104 = vector.broadcast %cst_36 : f32 to vector<2x16xf32>
    %105 = arith.addf %104, %103 : vector<2x16xf32>
    %106 = arith.divf %104, %105 : vector<2x16xf32>
    %107 = arith.mulf %98, %75 : vector<2x16xf32>
    %108 = arith.mulf %92, %100 : vector<2x16xf32>
    %109 = arith.addf %107, %108 : vector<2x16xf32>
    %110 = math.tanh %109 : vector<2x16xf32>
    %111 = arith.mulf %106, %110 : vector<2x16xf32>
    %c2_i32_37 = arith.constant 2 : i32
    %112 = arith.muli %c2_i32_30, %c2_i32_37 : i32
    %113 = arith.index_cast %112 : i32 to index
    %c0_38 = arith.constant 0 : index
    %114 = vector.load %arg6[%113, %c0_38] : memref<16x16xf32, #tpu.memory_space<vmem>>, vector<2x16xf32>
    tpu.vector_store %arg6[%113, %c0_38], %111 {strides = array<i32>} : memref<16x16xf32, #tpu.memory_space<vmem>>, vector<2x16xf32>,
    %c3_i32 = arith.constant 3 : i32
    %c2_i32_39 = arith.constant 2 : i32
    %115 = arith.muli %c3_i32, %c2_i32_39 : i32
    %116 = arith.index_cast %115 : i32 to index
    %c0_40 = arith.constant 0 : index
    %117 = vector.load %arg7[%116, %c0_40] : memref<16x64xf32, #tpu.memory_space<vmem>>, vector<2x64xf32>
    %118 = arith.truncf %111 : vector<2x16xf32> to vector<2x16xbf16>
    %cst_41 = arith.constant dense<0.000000e+00> : vector<2x64xf32>
    %119 = tpu.matmul %118, %10, %cst_41 {dimension_numbers = #tpu.dot_dimension_numbers<[1], [0], [0], [1], [0, 0, 1, 1], [], []>} : vector<2x16xbf16>, vector<16x64xbf16>, vector<2x64xf32> -> vector<2x64xf32>
    %120 = arith.addf %117, %119 : vector<2x64xf32>
    %121 = vector.extract_strided_slice %120 {offsets = [0, 0], sizes = [2, 16], strides = [1, 1]} : vector<2x64xf32> to vector<2x16xf32>
    %122 = arith.negf %121 : vector<2x16xf32>
    %123 = math.exp %122 : vector<2x16xf32>
    %cst_42 = arith.constant 1.000000e+00 : f32
    %124 = vector.broadcast %cst_42 : f32 to vector<2x16xf32>
    %125 = arith.addf %124, %123 : vector<2x16xf32>
    %126 = arith.divf %124, %125 : vector<2x16xf32>
    %127 = vector.extract_strided_slice %120 {offsets = [0, 16], sizes = [2, 16], strides = [1, 1]} : vector<2x64xf32> to vector<2x16xf32>
    %128 = arith.negf %127 : vector<2x16xf32>
    %129 = math.exp %128 : vector<2x16xf32>
    %cst_43 = arith.constant 1.000000e+00 : f32
    %130 = vector.broadcast %cst_43 : f32 to vector<2x16xf32>
    %131 = arith.addf %130, %129 : vector<2x16xf32>
    %132 = arith.divf %130, %131 : vector<2x16xf32>
    %133 = vector.extract_strided_slice %120 {offsets = [0, 32], sizes = [2, 16], strides = [1, 1]} : vector<2x64xf32> to vector<2x16xf32>
    %134 = math.tanh %133 : vector<2x16xf32>
    %135 = vector.extract_strided_slice %120 {offsets = [0, 48], sizes = [2, 16], strides = [1, 1]} : vector<2x64xf32> to vector<2x16xf32>
    %136 = arith.negf %135 : vector<2x16xf32>
    %137 = math.exp %136 : vector<2x16xf32>
    %cst_44 = arith.constant 1.000000e+00 : f32
    %138 = vector.broadcast %cst_44 : f32 to vector<2x16xf32>
    %139 = arith.addf %138, %137 : vector<2x16xf32>
    %140 = arith.divf %138, %139 : vector<2x16xf32>
    %141 = arith.mulf %132, %109 : vector<2x16xf32>
    %142 = arith.mulf %126, %134 : vector<2x16xf32>
    %143 = arith.addf %141, %142 : vector<2x16xf32>
    %144 = math.tanh %143 : vector<2x16xf32>
    %145 = arith.mulf %140, %144 : vector<2x16xf32>
    %c2_i32_45 = arith.constant 2 : i32
    %146 = arith.muli %c3_i32, %c2_i32_45 : i32
    %147 = arith.index_cast %146 : i32 to index
    %c0_46 = arith.constant 0 : index
    %148 = vector.load %arg6[%147, %c0_46] : memref<16x16xf32, #tpu.memory_space<vmem>>, vector<2x16xf32>
    tpu.vector_store %arg6[%147, %c0_46], %145 {strides = array<i32>} : memref<16x16xf32, #tpu.memory_space<vmem>>, vector<2x16xf32>,
    %c4_i32 = arith.constant 4 : i32
    %c2_i32_47 = arith.constant 2 : i32
    %149 = arith.muli %c4_i32, %c2_i32_47 : i32
    %150 = arith.index_cast %149 : i32 to index
    %c0_48 = arith.constant 0 : index
    %151 = vector.load %arg7[%150, %c0_48] : memref<16x64xf32, #tpu.memory_space<vmem>>, vector<2x64xf32>
    %152 = arith.truncf %145 : vector<2x16xf32> to vector<2x16xbf16>
    %cst_49 = arith.constant dense<0.000000e+00> : vector<2x64xf32>
    %153 = tpu.matmul %152, %10, %cst_49 {dimension_numbers = #tpu.dot_dimension_numbers<[1], [0], [0], [1], [0, 0, 1, 1], [], []>} : vector<2x16xbf16>, vector<16x64xbf16>, vector<2x64xf32> -> vector<2x64xf32>
    %154 = arith.addf %151, %153 : vector<2x64xf32>
    %155 = vector.extract_strided_slice %154 {offsets = [0, 0], sizes = [2, 16], strides = [1, 1]} : vector<2x64xf32> to vector<2x16xf32>
    %156 = arith.negf %155 : vector<2x16xf32>
    %157 = math.exp %156 : vector<2x16xf32>
    %cst_50 = arith.constant 1.000000e+00 : f32
    %158 = vector.broadcast %cst_50 : f32 to vector<2x16xf32>
    %159 = arith.addf %158, %157 : vector<2x16xf32>
    %160 = arith.divf %158, %159 : vector<2x16xf32>
    %161 = vector.extract_strided_slice %154 {offsets = [0, 16], sizes = [2, 16], strides = [1, 1]} : vector<2x64xf32> to vector<2x16xf32>
    %162 = arith.negf %161 : vector<2x16xf32>
    %163 = math.exp %162 : vector<2x16xf32>
    %cst_51 = arith.constant 1.000000e+00 : f32
    %164 = vector.broadcast %cst_51 : f32 to vector<2x16xf32>
    %165 = arith.addf %164, %163 : vector<2x16xf32>
    %166 = arith.divf %164, %165 : vector<2x16xf32>
    %167 = vector.extract_strided_slice %154 {offsets = [0, 32], sizes = [2, 16], strides = [1, 1]} : vector<2x64xf32> to vector<2x16xf32>
    %168 = math.tanh %167 : vector<2x16xf32>
    %169 = vector.extract_strided_slice %154 {offsets = [0, 48], sizes = [2, 16], strides = [1, 1]} : vector<2x64xf32> to vector<2x16xf32>
    %170 = arith.negf %169 : vector<2x16xf32>
    %171 = math.exp %170 : vector<2x16xf32>
    %cst_52 = arith.constant 1.000000e+00 : f32
    %172 = vector.broadcast %cst_52 : f32 to vector<2x16xf32>
    %173 = arith.addf %172, %171 : vector<2x16xf32>
    %174 = arith.divf %172, %173 : vector<2x16xf32>
    %175 = arith.mulf %166, %143 : vector<2x16xf32>
    %176 = arith.mulf %160, %168 : vector<2x16xf32>
    %177 = arith.addf %175, %176 : vector<2x16xf32>
    %178 = math.tanh %177 : vector<2x16xf32>
    %179 = arith.mulf %174, %178 : vector<2x16xf32>
    %c2_i32_53 = arith.constant 2 : i32
    %180 = arith.muli %c4_i32, %c2_i32_53 : i32
    %181 = arith.index_cast %180 : i32 to index
    %c0_54 = arith.constant 0 : index
    %182 = vector.load %arg6[%181, %c0_54] : memref<16x16xf32, #tpu.memory_space<vmem>>, vector<2x16xf32>
    tpu.vector_store %arg6[%181, %c0_54], %179 {strides = array<i32>} : memref<16x16xf32, #tpu.memory_space<vmem>>, vector<2x16xf32>,
    %c5_i32 = arith.constant 5 : i32
    %c2_i32_55 = arith.constant 2 : i32
    %183 = arith.muli %c5_i32, %c2_i32_55 : i32
    %184 = arith.index_cast %183 : i32 to index
    %c0_56 = arith.constant 0 : index
    %185 = vector.load %arg7[%184, %c0_56] : memref<16x64xf32, #tpu.memory_space<vmem>>, vector<2x64xf32>
    %186 = arith.truncf %179 : vector<2x16xf32> to vector<2x16xbf16>
    %cst_57 = arith.constant dense<0.000000e+00> : vector<2x64xf32>
    %187 = tpu.matmul %186, %10, %cst_57 {dimension_numbers = #tpu.dot_dimension_numbers<[1], [0], [0], [1], [0, 0, 1, 1], [], []>} : vector<2x16xbf16>, vector<16x64xbf16>, vector<2x64xf32> -> vector<2x64xf32>
    %188 = arith.addf %185, %187 : vector<2x64xf32>
    %189 = vector.extract_strided_slice %188 {offsets = [0, 0], sizes = [2, 16], strides = [1, 1]} : vector<2x64xf32> to vector<2x16xf32>
    %190 = arith.negf %189 : vector<2x16xf32>
    %191 = math.exp %190 : vector<2x16xf32>
    %cst_58 = arith.constant 1.000000e+00 : f32
    %192 = vector.broadcast %cst_58 : f32 to vector<2x16xf32>
    %193 = arith.addf %192, %191 : vector<2x16xf32>
    %194 = arith.divf %192, %193 : vector<2x16xf32>
    %195 = vector.extract_strided_slice %188 {offsets = [0, 16], sizes = [2, 16], strides = [1, 1]} : vector<2x64xf32> to vector<2x16xf32>
    %196 = arith.negf %195 : vector<2x16xf32>
    %197 = math.exp %196 : vector<2x16xf32>
    %cst_59 = arith.constant 1.000000e+00 : f32
    %198 = vector.broadcast %cst_59 : f32 to vector<2x16xf32>
    %199 = arith.addf %198, %197 : vector<2x16xf32>
    %200 = arith.divf %198, %199 : vector<2x16xf32>
    %201 = vector.extract_strided_slice %188 {offsets = [0, 32], sizes = [2, 16], strides = [1, 1]} : vector<2x64xf32> to vector<2x16xf32>
    %202 = math.tanh %201 : vector<2x16xf32>
    %203 = vector.extract_strided_slice %188 {offsets = [0, 48], sizes = [2, 16], strides = [1, 1]} : vector<2x64xf32> to vector<2x16xf32>
    %204 = arith.negf %203 : vector<2x16xf32>
    %205 = math.exp %204 : vector<2x16xf32>
    %cst_60 = arith.constant 1.000000e+00 : f32
    %206 = vector.broadcast %cst_60 : f32 to vector<2x16xf32>
    %207 = arith.addf %206, %205 : vector<2x16xf32>
    %208 = arith.divf %206, %207 : vector<2x16xf32>
    %209 = arith.mulf %200, %177 : vector<2x16xf32>
    %210 = arith.mulf %194, %202 : vector<2x16xf32>
    %211 = arith.addf %209, %210 : vector<2x16xf32>
    %212 = math.tanh %211 : vector<2x16xf32>
    %213 = arith.mulf %208, %212 : vector<2x16xf32>
    %c2_i32_61 = arith.constant 2 : i32
    %214 = arith.muli %c5_i32, %c2_i32_61 : i32
    %215 = arith.index_cast %214 : i32 to index
    %c0_62 = arith.constant 0 : index
    %216 = vector.load %arg6[%215, %c0_62] : memref<16x16xf32, #tpu.memory_space<vmem>>, vector<2x16xf32>
    tpu.vector_store %arg6[%215, %c0_62], %213 {strides = array<i32>} : memref<16x16xf32, #tpu.memory_space<vmem>>, vector<2x16xf32>,
    %c6_i32 = arith.constant 6 : i32
    %c2_i32_63 = arith.constant 2 : i32
    %217 = arith.muli %c6_i32, %c2_i32_63 : i32
    %218 = arith.index_cast %217 : i32 to index
    %c0_64 = arith.constant 0 : index
    %219 = vector.load %arg7[%218, %c0_64] : memref<16x64xf32, #tpu.memory_space<vmem>>, vector<2x64xf32>
    %220 = arith.truncf %213 : vector<2x16xf32> to vector<2x16xbf16>
    %cst_65 = arith.constant dense<0.000000e+00> : vector<2x64xf32>
    %221 = tpu.matmul %220, %10, %cst_65 {dimension_numbers = #tpu.dot_dimension_numbers<[1], [0], [0], [1], [0, 0, 1, 1], [], []>} : vector<2x16xbf16>, vector<16x64xbf16>, vector<2x64xf32> -> vector<2x64xf32>
    %222 = arith.addf %219, %221 : vector<2x64xf32>
    %223 = vector.extract_strided_slice %222 {offsets = [0, 0], sizes = [2, 16], strides = [1, 1]} : vector<2x64xf32> to vector<2x16xf32>
    %224 = arith.negf %223 : vector<2x16xf32>
    %225 = math.exp %224 : vector<2x16xf32>
    %cst_66 = arith.constant 1.000000e+00 : f32
    %226 = vector.broadcast %cst_66 : f32 to vector<2x16xf32>
    %227 = arith.addf %226, %225 : vector<2x16xf32>
    %228 = arith.divf %226, %227 : vector<2x16xf32>
    %229 = vector.extract_strided_slice %222 {offsets = [0, 16], sizes = [2, 16], strides = [1, 1]} : vector<2x64xf32> to vector<2x16xf32>
    %230 = arith.negf %229 : vector<2x16xf32>
    %231 = math.exp %230 : vector<2x16xf32>
    %cst_67 = arith.constant 1.000000e+00 : f32
    %232 = vector.broadcast %cst_67 : f32 to vector<2x16xf32>
    %233 = arith.addf %232, %231 : vector<2x16xf32>
    %234 = arith.divf %232, %233 : vector<2x16xf32>
    %235 = vector.extract_strided_slice %222 {offsets = [0, 32], sizes = [2, 16], strides = [1, 1]} : vector<2x64xf32> to vector<2x16xf32>
    %236 = math.tanh %235 : vector<2x16xf32>
    %237 = vector.extract_strided_slice %222 {offsets = [0, 48], sizes = [2, 16], strides = [1, 1]} : vector<2x64xf32> to vector<2x16xf32>
    %238 = arith.negf %237 : vector<2x16xf32>
    %239 = math.exp %238 : vector<2x16xf32>
    %cst_68 = arith.constant 1.000000e+00 : f32
    %240 = vector.broadcast %cst_68 : f32 to vector<2x16xf32>
    %241 = arith.addf %240, %239 : vector<2x16xf32>
    %242 = arith.divf %240, %241 : vector<2x16xf32>
    %243 = arith.mulf %234, %211 : vector<2x16xf32>
    %244 = arith.mulf %228, %236 : vector<2x16xf32>
    %245 = arith.addf %243, %244 : vector<2x16xf32>
    %246 = math.tanh %245 : vector<2x16xf32>
    %247 = arith.mulf %242, %246 : vector<2x16xf32>
    %c2_i32_69 = arith.constant 2 : i32
    %248 = arith.muli %c6_i32, %c2_i32_69 : i32
    %249 = arith.index_cast %248 : i32 to index
    %c0_70 = arith.constant 0 : index
    %250 = vector.load %arg6[%249, %c0_70] : memref<16x16xf32, #tpu.memory_space<vmem>>, vector<2x16xf32>
    tpu.vector_store %arg6[%249, %c0_70], %247 {strides = array<i32>} : memref<16x16xf32, #tpu.memory_space<vmem>>, vector<2x16xf32>,
    %c7_i32 = arith.constant 7 : i32
    %c2_i32_71 = arith.constant 2 : i32
    %251 = arith.muli %c7_i32, %c2_i32_71 : i32
    %252 = arith.index_cast %251 : i32 to index
    %c0_72 = arith.constant 0 : index
    %253 = vector.load %arg7[%252, %c0_72] : memref<16x64xf32, #tpu.memory_space<vmem>>, vector<2x64xf32>
    %254 = arith.truncf %247 : vector<2x16xf32> to vector<2x16xbf16>
    %cst_73 = arith.constant dense<0.000000e+00> : vector<2x64xf32>
    %255 = tpu.matmul %254, %10, %cst_73 {dimension_numbers = #tpu.dot_dimension_numbers<[1], [0], [0], [1], [0, 0, 1, 1], [], []>} : vector<2x16xbf16>, vector<16x64xbf16>, vector<2x64xf32> -> vector<2x64xf32>
    %256 = arith.addf %253, %255 : vector<2x64xf32>
    %257 = vector.extract_strided_slice %256 {offsets = [0, 0], sizes = [2, 16], strides = [1, 1]} : vector<2x64xf32> to vector<2x16xf32>
    %258 = arith.negf %257 : vector<2x16xf32>
    %259 = math.exp %258 : vector<2x16xf32>
    %cst_74 = arith.constant 1.000000e+00 : f32
    %260 = vector.broadcast %cst_74 : f32 to vector<2x16xf32>
    %261 = arith.addf %260, %259 : vector<2x16xf32>
    %262 = arith.divf %260, %261 : vector<2x16xf32>
    %263 = vector.extract_strided_slice %256 {offsets = [0, 16], sizes = [2, 16], strides = [1, 1]} : vector<2x64xf32> to vector<2x16xf32>
    %264 = arith.negf %263 : vector<2x16xf32>
    %265 = math.exp %264 : vector<2x16xf32>
    %cst_75 = arith.constant 1.000000e+00 : f32
    %266 = vector.broadcast %cst_75 : f32 to vector<2x16xf32>
    %267 = arith.addf %266, %265 : vector<2x16xf32>
    %268 = arith.divf %266, %267 : vector<2x16xf32>
    %269 = vector.extract_strided_slice %256 {offsets = [0, 32], sizes = [2, 16], strides = [1, 1]} : vector<2x64xf32> to vector<2x16xf32>
    %270 = math.tanh %269 : vector<2x16xf32>
    %271 = vector.extract_strided_slice %256 {offsets = [0, 48], sizes = [2, 16], strides = [1, 1]} : vector<2x64xf32> to vector<2x16xf32>
    %272 = arith.negf %271 : vector<2x16xf32>
    %273 = math.exp %272 : vector<2x16xf32>
    %cst_76 = arith.constant 1.000000e+00 : f32
    %274 = vector.broadcast %cst_76 : f32 to vector<2x16xf32>
    %275 = arith.addf %274, %273 : vector<2x16xf32>
    %276 = arith.divf %274, %275 : vector<2x16xf32>
    %277 = arith.mulf %268, %245 : vector<2x16xf32>
    %278 = arith.mulf %262, %270 : vector<2x16xf32>
    %279 = arith.addf %277, %278 : vector<2x16xf32>
    %280 = math.tanh %279 : vector<2x16xf32>
    %281 = arith.mulf %276, %280 : vector<2x16xf32>
    %c2_i32_77 = arith.constant 2 : i32
    %282 = arith.muli %c7_i32, %c2_i32_77 : i32
    %283 = arith.index_cast %282 : i32 to index
    %c0_78 = arith.constant 0 : index
    %284 = vector.load %arg6[%283, %c0_78] : memref<16x16xf32, #tpu.memory_space<vmem>>, vector<2x16xf32>
    tpu.vector_store %arg6[%283, %c0_78], %281 {strides = array<i32>} : memref<16x16xf32, #tpu.memory_space<vmem>>, vector<2x16xf32>,
    %c8_i32 = arith.constant 8 : i32
    %c0_79 = arith.constant 0 : index
    %c0_80 = arith.constant 0 : index
    %285 = vector.load %arg8[%c0_79, %c0_80] : memref<2x16xf32, #tpu.memory_space<vmem>>, vector<2x16xf32>
    tpu.vector_store %arg8[%c0_79, %c0_80], %281 {strides = array<i32>} : memref<2x16xf32, #tpu.memory_space<vmem>>, vector<2x16xf32>,
    %c0_81 = arith.constant 0 : index
    %c0_82 = arith.constant 0 : index
    %286 = vector.load %arg9[%c0_81, %c0_82] : memref<2x16xf32, #tpu.memory_space<vmem>>, vector<2x16xf32>
    tpu.vector_store %arg9[%c0_81, %c0_82], %279 {strides = array<i32>} : memref<2x16xf32, #tpu.memory_space<vmem>>, vector<2x16xf32>,
    return
  }
  func.func @transform_0(%arg0: i32, %arg1: i32) -> (i32, i32) {
    %c1_i32 = arith.constant 1 : i32
    %0 = arith.muli %arg0, %c1_i32 : i32
    %1 = arith.addi %0, %arg1 : i32
    %c0_i32 = arith.constant 0 : i32
    %c0_i32_0 = arith.constant 0 : i32
    return %1, %c0_i32 : i32, i32
  }
  func.func @transform_1(%arg0: i32, %arg1: i32) -> (i32, i32) {
    %c0_i32 = arith.constant 0 : i32
    %c0_i32_0 = arith.constant 0 : i32
    %c0_i32_1 = arith.constant 0 : i32
    return %c0_i32, %c0_i32_0 : i32, i32
  }
  func.func @transform_2(%arg0: i32, %arg1: i32) -> (i32, i32) {
    %c0_i32 = arith.constant 0 : i32
    %c0_i32_0 = arith.constant 0 : i32
    %c0_i32_1 = arith.constant 0 : i32
    return %c0_i32, %c0_i32_0 : i32, i32
  }
  func.func @transform_3(%arg0: i32, %arg1: i32) -> (i32, i32) {
    %c0_i32 = arith.constant 0 : i32
    %c0_i32_0 = arith.constant 0 : i32
    %c0_i32_1 = arith.constant 0 : i32
    return %c0_i32, %c0_i32_0 : i32, i32
  }
  func.func @transform_4(%arg0: i32, %arg1: i32) -> (i32, i32) {
    %c1_i32 = arith.constant 1 : i32
    %0 = arith.muli %arg0, %c1_i32 : i32
    %1 = arith.addi %0, %arg1 : i32
    %c0_i32 = arith.constant 0 : i32
    %c0_i32_0 = arith.constant 0 : i32
    return %1, %c0_i32 : i32, i32
  }
}

module attributes {stable_mosaic.version = 11 : i64} {
  func.func @_lstm_unit_kernel(%arg0: i32, %arg1: i32, %arg2: memref<16x48xf32, #tpu.memory_space<vmem>>, %arg3: memref<48x64xf32, #tpu.memory_space<vmem>>, %arg4: memref<16x64xbf16, #tpu.memory_space<vmem>>, %arg5: memref<1x64xf32, #tpu.memory_space<vmem>>, %arg6: memref<16x16xf32, #tpu.memory_space<vmem>>, %arg7: memref<16x64xf32, #tpu.memory_space<vmem>>, %arg8: memref<2x16xf32, #tpu.memory_space<vmem>>, %arg9: memref<2x16xf32, #tpu.memory_space<vmem>>) attributes {dimension_semantics = [#tpu.dimension_semantics<parallel>, #tpu.dimension_semantics<arbitrary>], iteration_bounds = array<i64: 1, 1>, scalar_prefetch = 0 : i64, scratch_operands = 3 : i64, tpu.core_type = #tpu.core_type<tc>, window_params = [{transform_indices = @transform_0, window_bounds = array<i64: 16, 48>}, {pipeline_mode = #tpu.pipeline_mode<synchronous>, transform_indices = @transform_1, window_bounds = array<i64: 48, 64>}, {pipeline_mode = #tpu.pipeline_mode<synchronous>, transform_indices = @transform_2, window_bounds = array<i64: 16, 64>}, {pipeline_mode = #tpu.pipeline_mode<synchronous>, transform_indices = @transform_3, window_bounds = array<i64: 1, 64>}, {transform_indices = @transform_4, window_bounds = array<i64: 16, 16>}]} {
    %c0 = arith.constant 0 : index
    %c0_0 = arith.constant 0 : index
    %0 = vector.load %arg2[%c0, %c0_0] : memref<16x48xf32, #tpu.memory_space<vmem>>, vector<16x48xf32>
    %c0_1 = arith.constant 0 : index
    %c0_2 = arith.constant 0 : index
    %1 = vector.load %arg3[%c0_1, %c0_2] : memref<48x64xf32, #tpu.memory_space<vmem>>, vector<48x64xf32>
    %cst = arith.constant dense<0.000000e+00> : vector<16x64xf32>
    %2 = tpu.matmul %0, %1, %cst {dimension_numbers = #tpu.dot_dimension_numbers<[1], [0], [0], [1], [0, 0, 1, 1], [], []>} : vector<16x48xf32>, vector<48x64xf32>, vector<16x64xf32> -> vector<16x64xf32>
    %c0_3 = arith.constant 0 : index
    %c0_4 = arith.constant 0 : index
    %3 = vector.load %arg5[%c0_3, %c0_4] : memref<1x64xf32, #tpu.memory_space<vmem>>, vector<1x64xf32>
    %4 = vector.broadcast %3 : vector<1x64xf32> to vector<16x64xf32>
    %5 = arith.addf %2, %4 : vector<16x64xf32>
    %c0_5 = arith.constant 0 : index
    %c0_6 = arith.constant 0 : index
    %6 = vector.load %arg7[%c0_5, %c0_6] : memref<16x64xf32, #tpu.memory_space<vmem>>, vector<16x64xf32>
    tpu.vector_store %arg7[%c0_5, %c0_6], %5 {strides = array<i32>} : memref<16x64xf32, #tpu.memory_space<vmem>>, vector<16x64xf32>,
    %c0_i32 = arith.constant 0 : i32
    %7 = arith.cmpi eq, %arg1, %c0_i32 : i32
    %8 = arith.extui %7 : i1 to i32
    %c0_i32_7 = arith.constant 0 : i32
    %9 = arith.cmpi ne, %8, %c0_i32_7 : i32
    scf.if %9 {
      %cst_83 = arith.constant 0.000000e+00 : f32
      %287 = vector.broadcast %cst_83 : f32 to vector<2x16xf32>
      %c0_84 = arith.constant 0 : index
      %c0_85 = arith.constant 0 : index
      %288 = vector.load %arg8[%c0_84, %c0_85] : memref<2x16xf32, #tpu.memory_space<vmem>>, vector<2x16xf32>
      tpu.vector_store %arg8[%c0_84, %c0_85], %287 {strides = array<i32>} : memref<2x16xf32, #tpu.memory_space<vmem>>, vector<2x16xf32>,
      %cst_86 = arith.constant 0.000000e+00 : f32
      %289 = vector.broadcast %cst_86 : f32 to vector<2x16xf32>
      %c0_87 = arith.constant 0 : index
      %c0_88 = arith.constant 0 : index
      %290 = vector.load %arg9[%c0_87, %c0_88] : memref<2x16xf32, #tpu.memory_space<vmem>>, vector<2x16xf32>
      tpu.vector_store %arg9[%c0_87, %c0_88], %289 {strides = array<i32>} : memref<2x16xf32, #tpu.memory_space<vmem>>, vector<2x16xf32>,
    } else {
    }
    %c0_8 = arith.constant 0 : index
    %c0_9 = arith.constant 0 : index
    %10 = vector.load %arg4[%c0_8, %c0_9] : memref<16x64xbf16, #tpu.memory_space<vmem>>, vector<16x64xbf16>
    %c0_10 = arith.constant 0 : index
    %c0_11 = arith.constant 0 : index
    %11 = vector.load %arg8[%c0_10, %c0_11] : memref<2x16xf32, #tpu.memory_space<vmem>>, vector<2x16xf32>
    %c0_12 = arith.constant 0 : index
    %c0_13 = arith.constant 0 : index
    %12 = vector.load %arg9[%c0_12, %c0_13] : memref<2x16xf32, #tpu.memory_space<vmem>>, vector<2x16xf32>
    %c0_i32_14 = arith.constant 0 : i32
    %c2_i32 = arith.constant 2 : i32
    %13 = arith.muli %c0_i32_14, %c2_i32 : i32
    %14 = arith.index_cast %13 : i32 to index
    %c0_15 = arith.constant 0 : index
    %15 = vector.load %arg7[%14, %c0_15] : memref<16x64xf32, #tpu.memory_space<vmem>>, vector<2x64xf32>
    %16 = arith.truncf %11 : vector<2x16xf32> to vector<2x16xbf16>
    %cst_16 = arith.constant dense<0.000000e+00> : vector<2x64xf32>
    %17 = tpu.matmul %16, %10, %cst_16 {dimension_numbers = #tpu.dot_dimension_numbers<[1], [0], [0], [1], [0, 0, 1, 1], [], []>} : vector<2x16xbf16>, vector<16x64xbf16>, vector<2x64xf32> -> vector<2x64xf32>
    %18 = arith.addf %15, %17 : vector<2x64xf32>
    %19 = vector.extract_strided_slice %18 {offsets = [0, 0], sizes = [2, 16], strides = [1, 1]} : vector<2x64xf32> to vector<2x16xf32>
    %20 = arith.negf %19 : vector<2x16xf32>
    %21 = math.exp %20 : vector<2x16xf32>
    %cst_17 = arith.constant 1.000000e+00 : f32
    %22 = vector.broadcast %cst_17 : f32 to vector<2x16xf32>
    %23 = arith.addf %22, %21 : vector<2x16xf32>
    %24 = arith.divf %22, %23 : vector<2x16xf32>
    %25 = vector.extract_strided_slice %18 {offsets = [0, 16], sizes = [2, 16], strides = [1, 1]} : vector<2x64xf32> to vector<2x16xf32>
    %26 = arith.negf %25 : vector<2x16xf32>
    %27 = math.exp %26 : vector<2x16xf32>
    %cst_18 = arith.constant 1.000000e+00 : f32
    %28 = vector.broadcast %cst_18 : f32 to vector<2x16xf32>
    %29 = arith.addf %28, %27 : vector<2x16xf32>
    %30 = arith.divf %28, %29 : vector<2x16xf32>
    %31 = vector.extract_strided_slice %18 {offsets = [0, 32], sizes = [2, 16], strides = [1, 1]} : vector<2x64xf32> to vector<2x16xf32>
    %32 = math.tanh %31 : vector<2x16xf32>
    %33 = vector.extract_strided_slice %18 {offsets = [0, 48], sizes = [2, 16], strides = [1, 1]} : vector<2x64xf32> to vector<2x16xf32>
    %34 = arith.negf %33 : vector<2x16xf32>
    %35 = math.exp %34 : vector<2x16xf32>
    %cst_19 = arith.constant 1.000000e+00 : f32
    %36 = vector.broadcast %cst_19 : f32 to vector<2x16xf32>
    %37 = arith.addf %36, %35 : vector<2x16xf32>
    %38 = arith.divf %36, %37 : vector<2x16xf32>
    %39 = arith.mulf %30, %12 : vector<2x16xf32>
    %40 = arith.mulf %24, %32 : vector<2x16xf32>
    %41 = arith.addf %39, %40 : vector<2x16xf32>
    %42 = math.tanh %41 : vector<2x16xf32>
    %43 = arith.mulf %38, %42 : vector<2x16xf32>
    %c2_i32_20 = arith.constant 2 : i32
    %44 = arith.muli %c0_i32_14, %c2_i32_20 : i32
    %45 = arith.index_cast %44 : i32 to index
    %c0_21 = arith.constant 0 : index
    %46 = vector.load %arg6[%45, %c0_21] : memref<16x16xf32, #tpu.memory_space<vmem>>, vector<2x16xf32>
    tpu.vector_store %arg6[%45, %c0_21], %43 {strides = array<i32>} : memref<16x16xf32, #tpu.memory_space<vmem>>, vector<2x16xf32>,
    %c1_i32 = arith.constant 1 : i32
    %c2_i32_22 = arith.constant 2 : i32
    %47 = arith.muli %c1_i32, %c2_i32_22 : i32
    %48 = arith.index_cast %47 : i32 to index
    %c0_23 = arith.constant 0 : index
    %49 = vector.load %arg7[%48, %c0_23] : memref<16x64xf32, #tpu.memory_space<vmem>>, vector<2x64xf32>
    %50 = arith.truncf %43 : vector<2x16xf32> to vector<2x16xbf16>
    %cst_24 = arith.constant dense<0.000000e+00> : vector<2x64xf32>
    %51 = tpu.matmul %50, %10, %cst_24 {dimension_numbers = #tpu.dot_dimension_numbers<[1], [0], [0], [1], [0, 0, 1, 1], [], []>} : vector<2x16xbf16>, vector<16x64xbf16>, vector<2x64xf32> -> vector<2x64xf32>
    %52 = arith.addf %49, %51 : vector<2x64xf32>
    %53 = vector.extract_strided_slice %52 {offsets = [0, 0], sizes = [2, 16], strides = [1, 1]} : vector<2x64xf32> to vector<2x16xf32>
    %54 = arith.negf %53 : vector<2x16xf32>
    %55 = math.exp %54 : vector<2x16xf32>
    %cst_25 = arith.constant 1.000000e+00 : f32
    %56 = vector.broadcast %cst_25 : f32 to vector<2x16xf32>
    %57 = arith.addf %56, %55 : vector<2x16xf32>
    %58 = arith.divf %56, %57 : vector<2x16xf32>
    %59 = vector.extract_strided_slice %52 {offsets = [0, 16], sizes = [2, 16], strides = [1, 1]} : vector<2x64xf32> to vector<2x16xf32>
    %60 = arith.negf %59 : vector<2x16xf32>
    %61 = math.exp %60 : vector<2x16xf32>
    %cst_26 = arith.constant 1.000000e+00 : f32
    %62 = vector.broadcast %cst_26 : f32 to vector<2x16xf32>
    %63 = arith.addf %62, %61 : vector<2x16xf32>
    %64 = arith.divf %62, %63 : vector<2x16xf32>
    %65 = vector.extract_strided_slice %52 {offsets = [0, 32], sizes = [2, 16], strides = [1, 1]} : vector<2x64xf32> to vector<2x16xf32>
    %66 = math.tanh %65 : vector<2x16xf32>
    %67 = vector.extract_strided_slice %52 {offsets = [0, 48], sizes = [2, 16], strides = [1, 1]} : vector<2x64xf32> to vector<2x16xf32>
    %68 = arith.negf %67 : vector<2x16xf32>
    %69 = math.exp %68 : vector<2x16xf32>
    %cst_27 = arith.constant 1.000000e+00 : f32
    %70 = vector.broadcast %cst_27 : f32 to vector<2x16xf32>
    %71 = arith.addf %70, %69 : vector<2x16xf32>
    %72 = arith.divf %70, %71 : vector<2x16xf32>
    %73 = arith.mulf %64, %41 : vector<2x16xf32>
    %74 = arith.mulf %58, %66 : vector<2x16xf32>
    %75 = arith.addf %73, %74 : vector<2x16xf32>
    %76 = math.tanh %75 : vector<2x16xf32>
    %77 = arith.mulf %72, %76 : vector<2x16xf32>
    %c2_i32_28 = arith.constant 2 : i32
    %78 = arith.muli %c1_i32, %c2_i32_28 : i32
    %79 = arith.index_cast %78 : i32 to index
    %c0_29 = arith.constant 0 : index
    %80 = vector.load %arg6[%79, %c0_29] : memref<16x16xf32, #tpu.memory_space<vmem>>, vector<2x16xf32>
    tpu.vector_store %arg6[%79, %c0_29], %77 {strides = array<i32>} : memref<16x16xf32, #tpu.memory_space<vmem>>, vector<2x16xf32>,
    %c2_i32_30 = arith.constant 2 : i32
    %c2_i32_31 = arith.constant 2 : i32
    %81 = arith.muli %c2_i32_30, %c2_i32_31 : i32
    %82 = arith.index_cast %81 : i32 to index
    %c0_32 = arith.constant 0 : index
    %83 = vector.load %arg7[%82, %c0_32] : memref<16x64xf32, #tpu.memory_space<vmem>>, vector<2x64xf32>
    %84 = arith.truncf %77 : vector<2x16xf32> to vector<2x16xbf16>
    %cst_33 = arith.constant dense<0.000000e+00> : vector<2x64xf32>
    %85 = tpu.matmul %84, %10, %cst_33 {dimension_numbers = #tpu.dot_dimension_numbers<[1], [0], [0], [1], [0, 0, 1, 1], [], []>} : vector<2x16xbf16>, vector<16x64xbf16>, vector<2x64xf32> -> vector<2x64xf32>
    %86 = arith.addf %83, %85 : vector<2x64xf32>
    %87 = vector.extract_strided_slice %86 {offsets = [0, 0], sizes = [2, 16], strides = [1, 1]} : vector<2x64xf32> to vector<2x16xf32>
    %88 = arith.negf %87 : vector<2x16xf32>
    %89 = math.exp %88 : vector<2x16xf32>
    %cst_34 = arith.constant 1.000000e+00 : f32
    %90 = vector.broadcast %cst_34 : f32 to vector<2x16xf32>
    %91 = arith.addf %90, %89 : vector<2x16xf32>
    %92 = arith.divf %90, %91 : vector<2x16xf32>
    %93 = vector.extract_strided_slice %86 {offsets = [0, 16], sizes = [2, 16], strides = [1, 1]} : vector<2x64xf32> to vector<2x16xf32>
    %94 = arith.negf %93 : vector<2x16xf32>
    %95 = math.exp %94 : vector<2x16xf32>
    %cst_35 = arith.constant 1.000000e+00 : f32
    %96 = vector.broadcast %cst_35 : f32 to vector<2x16xf32>
    %97 = arith.addf %96, %95 : vector<2x16xf32>
    %98 = arith.divf %96, %97 : vector<2x16xf32>
    %99 = vector.extract_strided_slice %86 {offsets = [0, 32], sizes = [2, 16], strides = [1, 1]} : vector<2x64xf32> to vector<2x16xf32>
    %100 = math.tanh %99 : vector<2x16xf32>
    %101 = vector.extract_strided_slice %86 {offsets = [0, 48], sizes = [2, 16], strides = [1, 1]} : vector<2x64xf32> to vector<2x16xf32>
    %102 = arith.negf %101 : vector<2x16xf32>
    %103 = math.exp %102 : vector<2x16xf32>
    %cst_36 = arith.constant 1.000000e+00 : f32
    %104 = vector.broadcast %cst_36 : f32 to vector<2x16xf32>
    %105 = arith.addf %104, %103 : vector<2x16xf32>
    %106 = arith.divf %104, %105 : vector<2x16xf32>
    %107 = arith.mulf %98, %75 : vector<2x16xf32>
    %108 = arith.mulf %92, %100 : vector<2x16xf32>
    %109 = arith.addf %107, %108 : vector<2x16xf32>
    %110 = math.tanh %109 : vector<2x16xf32>
    %111 = arith.mulf %106, %110 : vector<2x16xf32>
    %c2_i32_37 = arith.constant 2 : i32
    %112 = arith.muli %c2_i32_30, %c2_i32_37 : i32
    %113 = arith.index_cast %112 : i32 to index
    %c0_38 = arith.constant 0 : index
    %114 = vector.load %arg6[%113, %c0_38] : memref<16x16xf32, #tpu.memory_space<vmem>>, vector<2x16xf32>
    tpu.vector_store %arg6[%113, %c0_38], %111 {strides = array<i32>} : memref<16x16xf32, #tpu.memory_space<vmem>>, vector<2x16xf32>,
    %c3_i32 = arith.constant 3 : i32
    %c2_i32_39 = arith.constant 2 : i32
    %115 = arith.muli %c3_i32, %c2_i32_39 : i32
    %116 = arith.index_cast %115 : i32 to index
    %c0_40 = arith.constant 0 : index
    %117 = vector.load %arg7[%116, %c0_40] : memref<16x64xf32, #tpu.memory_space<vmem>>, vector<2x64xf32>
    %118 = arith.truncf %111 : vector<2x16xf32> to vector<2x16xbf16>
    %cst_41 = arith.constant dense<0.000000e+00> : vector<2x64xf32>
    %119 = tpu.matmul %118, %10, %cst_41 {dimension_numbers = #tpu.dot_dimension_numbers<[1], [0], [0], [1], [0, 0, 1, 1], [], []>} : vector<2x16xbf16>, vector<16x64xbf16>, vector<2x64xf32> -> vector<2x64xf32>
    %120 = arith.addf %117, %119 : vector<2x64xf32>
    %121 = vector.extract_strided_slice %120 {offsets = [0, 0], sizes = [2, 16], strides = [1, 1]} : vector<2x64xf32> to vector<2x16xf32>
    %122 = arith.negf %121 : vector<2x16xf32>
    %123 = math.exp %122 : vector<2x16xf32>
    %cst_42 = arith.constant 1.000000e+00 : f32
    %124 = vector.broadcast %cst_42 : f32 to vector<2x16xf32>
    %125 = arith.addf %124, %123 : vector<2x16xf32>
    %126 = arith.divf %124, %125 : vector<2x16xf32>
    %127 = vector.extract_strided_slice %120 {offsets = [0, 16], sizes = [2, 16], strides = [1, 1]} : vector<2x64xf32> to vector<2x16xf32>
    %128 = arith.negf %127 : vector<2x16xf32>
    %129 = math.exp %128 : vector<2x16xf32>
    %cst_43 = arith.constant 1.000000e+00 : f32
    %130 = vector.broadcast %cst_43 : f32 to vector<2x16xf32>
    %131 = arith.addf %130, %129 : vector<2x16xf32>
    %132 = arith.divf %130, %131 : vector<2x16xf32>
    %133 = vector.extract_strided_slice %120 {offsets = [0, 32], sizes = [2, 16], strides = [1, 1]} : vector<2x64xf32> to vector<2x16xf32>
    %134 = math.tanh %133 : vector<2x16xf32>
    %135 = vector.extract_strided_slice %120 {offsets = [0, 48], sizes = [2, 16], strides = [1, 1]} : vector<2x64xf32> to vector<2x16xf32>
    %136 = arith.negf %135 : vector<2x16xf32>
    %137 = math.exp %136 : vector<2x16xf32>
    %cst_44 = arith.constant 1.000000e+00 : f32
    %138 = vector.broadcast %cst_44 : f32 to vector<2x16xf32>
    %139 = arith.addf %138, %137 : vector<2x16xf32>
    %140 = arith.divf %138, %139 : vector<2x16xf32>
    %141 = arith.mulf %132, %109 : vector<2x16xf32>
    %142 = arith.mulf %126, %134 : vector<2x16xf32>
    %143 = arith.addf %141, %142 : vector<2x16xf32>
    %144 = math.tanh %143 : vector<2x16xf32>
    %145 = arith.mulf %140, %144 : vector<2x16xf32>
    %c2_i32_45 = arith.constant 2 : i32
    %146 = arith.muli %c3_i32, %c2_i32_45 : i32
    %147 = arith.index_cast %146 : i32 to index
    %c0_46 = arith.constant 0 : index
    %148 = vector.load %arg6[%147, %c0_46] : memref<16x16xf32, #tpu.memory_space<vmem>>, vector<2x16xf32>
    tpu.vector_store %arg6[%147, %c0_46], %145 {strides = array<i32>} : memref<16x16xf32, #tpu.memory_space<vmem>>, vector<2x16xf32>,
    %c4_i32 = arith.constant 4 : i32
    %c2_i32_47 = arith.constant 2 : i32
    %149 = arith.muli %c4_i32, %c2_i32_47 : i32
    %150 = arith.index_cast %149 : i32 to index
    %c0_48 = arith.constant 0 : index
    %151 = vector.load %arg7[%150, %c0_48] : memref<16x64xf32, #tpu.memory_space<vmem>>, vector<2x64xf32>
    %152 = arith.truncf %145 : vector<2x16xf32> to vector<2x16xbf16>
    %cst_49 = arith.constant dense<0.000000e+00> : vector<2x64xf32>
    %153 = tpu.matmul %152, %10, %cst_49 {dimension_numbers = #tpu.dot_dimension_numbers<[1], [0], [0], [1], [0, 0, 1, 1], [], []>} : vector<2x16xbf16>, vector<16x64xbf16>, vector<2x64xf32> -> vector<2x64xf32>
    %154 = arith.addf %151, %153 : vector<2x64xf32>
    %155 = vector.extract_strided_slice %154 {offsets = [0, 0], sizes = [2, 16], strides = [1, 1]} : vector<2x64xf32> to vector<2x16xf32>
    %156 = arith.negf %155 : vector<2x16xf32>
    %157 = math.exp %156 : vector<2x16xf32>
    %cst_50 = arith.constant 1.000000e+00 : f32
    %158 = vector.broadcast %cst_50 : f32 to vector<2x16xf32>
    %159 = arith.addf %158, %157 : vector<2x16xf32>
    %160 = arith.divf %158, %159 : vector<2x16xf32>
    %161 = vector.extract_strided_slice %154 {offsets = [0, 16], sizes = [2, 16], strides = [1, 1]} : vector<2x64xf32> to vector<2x16xf32>
    %162 = arith.negf %161 : vector<2x16xf32>
    %163 = math.exp %162 : vector<2x16xf32>
    %cst_51 = arith.constant 1.000000e+00 : f32
    %164 = vector.broadcast %cst_51 : f32 to vector<2x16xf32>
    %165 = arith.addf %164, %163 : vector<2x16xf32>
    %166 = arith.divf %164, %165 : vector<2x16xf32>
    %167 = vector.extract_strided_slice %154 {offsets = [0, 32], sizes = [2, 16], strides = [1, 1]} : vector<2x64xf32> to vector<2x16xf32>
    %168 = math.tanh %167 : vector<2x16xf32>
    %169 = vector.extract_strided_slice %154 {offsets = [0, 48], sizes = [2, 16], strides = [1, 1]} : vector<2x64xf32> to vector<2x16xf32>
    %170 = arith.negf %169 : vector<2x16xf32>
    %171 = math.exp %170 : vector<2x16xf32>
    %cst_52 = arith.constant 1.000000e+00 : f32
    %172 = vector.broadcast %cst_52 : f32 to vector<2x16xf32>
    %173 = arith.addf %172, %171 : vector<2x16xf32>
    %174 = arith.divf %172, %173 : vector<2x16xf32>
    %175 = arith.mulf %166, %143 : vector<2x16xf32>
    %176 = arith.mulf %160, %168 : vector<2x16xf32>
    %177 = arith.addf %175, %176 : vector<2x16xf32>
    %178 = math.tanh %177 : vector<2x16xf32>
    %179 = arith.mulf %174, %178 : vector<2x16xf32>
    %c2_i32_53 = arith.constant 2 : i32
    %180 = arith.muli %c4_i32, %c2_i32_53 : i32
    %181 = arith.index_cast %180 : i32 to index
    %c0_54 = arith.constant 0 : index
    %182 = vector.load %arg6[%181, %c0_54] : memref<16x16xf32, #tpu.memory_space<vmem>>, vector<2x16xf32>
    tpu.vector_store %arg6[%181, %c0_54], %179 {strides = array<i32>} : memref<16x16xf32, #tpu.memory_space<vmem>>, vector<2x16xf32>,
    %c5_i32 = arith.constant 5 : i32
    %c2_i32_55 = arith.constant 2 : i32
    %183 = arith.muli %c5_i32, %c2_i32_55 : i32
    %184 = arith.index_cast %183 : i32 to index
    %c0_56 = arith.constant 0 : index
    %185 = vector.load %arg7[%184, %c0_56] : memref<16x64xf32, #tpu.memory_space<vmem>>, vector<2x64xf32>
    %186 = arith.truncf %179 : vector<2x16xf32> to vector<2x16xbf16>
    %cst_57 = arith.constant dense<0.000000e+00> : vector<2x64xf32>
    %187 = tpu.matmul %186, %10, %cst_57 {dimension_numbers = #tpu.dot_dimension_numbers<[1], [0], [0], [1], [0, 0, 1, 1], [], []>} : vector<2x16xbf16>, vector<16x64xbf16>, vector<2x64xf32> -> vector<2x64xf32>
    %188 = arith.addf %185, %187 : vector<2x64xf32>
    %189 = vector.extract_strided_slice %188 {offsets = [0, 0], sizes = [2, 16], strides = [1, 1]} : vector<2x64xf32> to vector<2x16xf32>
    %190 = arith.negf %189 : vector<2x16xf32>
    %191 = math.exp %190 : vector<2x16xf32>
    %cst_58 = arith.constant 1.000000e+00 : f32
    %192 = vector.broadcast %cst_58 : f32 to vector<2x16xf32>
    %193 = arith.addf %192, %191 : vector<2x16xf32>
    %194 = arith.divf %192, %193 : vector<2x16xf32>
    %195 = vector.extract_strided_slice %188 {offsets = [0, 16], sizes = [2, 16], strides = [1, 1]} : vector<2x64xf32> to vector<2x16xf32>
    %196 = arith.negf %195 : vector<2x16xf32>
    %197 = math.exp %196 : vector<2x16xf32>
    %cst_59 = arith.constant 1.000000e+00 : f32
    %198 = vector.broadcast %cst_59 : f32 to vector<2x16xf32>
    %199 = arith.addf %198, %197 : vector<2x16xf32>
    %200 = arith.divf %198, %199 : vector<2x16xf32>
    %201 = vector.extract_strided_slice %188 {offsets = [0, 32], sizes = [2, 16], strides = [1, 1]} : vector<2x64xf32> to vector<2x16xf32>
    %202 = math.tanh %201 : vector<2x16xf32>
    %203 = vector.extract_strided_slice %188 {offsets = [0, 48], sizes = [2, 16], strides = [1, 1]} : vector<2x64xf32> to vector<2x16xf32>
    %204 = arith.negf %203 : vector<2x16xf32>
    %205 = math.exp %204 : vector<2x16xf32>
    %cst_60 = arith.constant 1.000000e+00 : f32
    %206 = vector.broadcast %cst_60 : f32 to vector<2x16xf32>
    %207 = arith.addf %206, %205 : vector<2x16xf32>
    %208 = arith.divf %206, %207 : vector<2x16xf32>
    %209 = arith.mulf %200, %177 : vector<2x16xf32>
    %210 = arith.mulf %194, %202 : vector<2x16xf32>
    %211 = arith.addf %209, %210 : vector<2x16xf32>
    %212 = math.tanh %211 : vector<2x16xf32>
    %213 = arith.mulf %208, %212 : vector<2x16xf32>
    %c2_i32_61 = arith.constant 2 : i32
    %214 = arith.muli %c5_i32, %c2_i32_61 : i32
    %215 = arith.index_cast %214 : i32 to index
    %c0_62 = arith.constant 0 : index
    %216 = vector.load %arg6[%215, %c0_62] : memref<16x16xf32, #tpu.memory_space<vmem>>, vector<2x16xf32>
    tpu.vector_store %arg6[%215, %c0_62], %213 {strides = array<i32>} : memref<16x16xf32, #tpu.memory_space<vmem>>, vector<2x16xf32>,
    %c6_i32 = arith.constant 6 : i32
    %c2_i32_63 = arith.constant 2 : i32
    %217 = arith.muli %c6_i32, %c2_i32_63 : i32
    %218 = arith.index_cast %217 : i32 to index
    %c0_64 = arith.constant 0 : index
    %219 = vector.load %arg7[%218, %c0_64] : memref<16x64xf32, #tpu.memory_space<vmem>>, vector<2x64xf32>
    %220 = arith.truncf %213 : vector<2x16xf32> to vector<2x16xbf16>
    %cst_65 = arith.constant dense<0.000000e+00> : vector<2x64xf32>
    %221 = tpu.matmul %220, %10, %cst_65 {dimension_numbers = #tpu.dot_dimension_numbers<[1], [0], [0], [1], [0, 0, 1, 1], [], []>} : vector<2x16xbf16>, vector<16x64xbf16>, vector<2x64xf32> -> vector<2x64xf32>
    %222 = arith.addf %219, %221 : vector<2x64xf32>
    %223 = vector.extract_strided_slice %222 {offsets = [0, 0], sizes = [2, 16], strides = [1, 1]} : vector<2x64xf32> to vector<2x16xf32>
    %224 = arith.negf %223 : vector<2x16xf32>
    %225 = math.exp %224 : vector<2x16xf32>
    %cst_66 = arith.constant 1.000000e+00 : f32
    %226 = vector.broadcast %cst_66 : f32 to vector<2x16xf32>
    %227 = arith.addf %226, %225 : vector<2x16xf32>
    %228 = arith.divf %226, %227 : vector<2x16xf32>
    %229 = vector.extract_strided_slice %222 {offsets = [0, 16], sizes = [2, 16], strides = [1, 1]} : vector<2x64xf32> to vector<2x16xf32>
    %230 = arith.negf %229 : vector<2x16xf32>
    %231 = math.exp %230 : vector<2x16xf32>
    %cst_67 = arith.constant 1.000000e+00 : f32
    %232 = vector.broadcast %cst_67 : f32 to vector<2x16xf32>
    %233 = arith.addf %232, %231 : vector<2x16xf32>
    %234 = arith.divf %232, %233 : vector<2x16xf32>
    %235 = vector.extract_strided_slice %222 {offsets = [0, 32], sizes = [2, 16], strides = [1, 1]} : vector<2x64xf32> to vector<2x16xf32>
    %236 = math.tanh %235 : vector<2x16xf32>
    %237 = vector.extract_strided_slice %222 {offsets = [0, 48], sizes = [2, 16], strides = [1, 1]} : vector<2x64xf32> to vector<2x16xf32>
    %238 = arith.negf %237 : vector<2x16xf32>
    %239 = math.exp %238 : vector<2x16xf32>
    %cst_68 = arith.constant 1.000000e+00 : f32
    %240 = vector.broadcast %cst_68 : f32 to vector<2x16xf32>
    %241 = arith.addf %240, %239 : vector<2x16xf32>
    %242 = arith.divf %240, %241 : vector<2x16xf32>
    %243 = arith.mulf %234, %211 : vector<2x16xf32>
    %244 = arith.mulf %228, %236 : vector<2x16xf32>
    %245 = arith.addf %243, %244 : vector<2x16xf32>
    %246 = math.tanh %245 : vector<2x16xf32>
    %247 = arith.mulf %242, %246 : vector<2x16xf32>
    %c2_i32_69 = arith.constant 2 : i32
    %248 = arith.muli %c6_i32, %c2_i32_69 : i32
    %249 = arith.index_cast %248 : i32 to index
    %c0_70 = arith.constant 0 : index
    %250 = vector.load %arg6[%249, %c0_70] : memref<16x16xf32, #tpu.memory_space<vmem>>, vector<2x16xf32>
    tpu.vector_store %arg6[%249, %c0_70], %247 {strides = array<i32>} : memref<16x16xf32, #tpu.memory_space<vmem>>, vector<2x16xf32>,
    %c7_i32 = arith.constant 7 : i32
    %c2_i32_71 = arith.constant 2 : i32
    %251 = arith.muli %c7_i32, %c2_i32_71 : i32
    %252 = arith.index_cast %251 : i32 to index
    %c0_72 = arith.constant 0 : index
    %253 = vector.load %arg7[%252, %c0_72] : memref<16x64xf32, #tpu.memory_space<vmem>>, vector<2x64xf32>
    %254 = arith.truncf %247 : vector<2x16xf32> to vector<2x16xbf16>
    %cst_73 = arith.constant dense<0.000000e+00> : vector<2x64xf32>
    %255 = tpu.matmul %254, %10, %cst_73 {dimension_numbers = #tpu.dot_dimension_numbers<[1], [0], [0], [1], [0, 0, 1, 1], [], []>} : vector<2x16xbf16>, vector<16x64xbf16>, vector<2x64xf32> -> vector<2x64xf32>
    %256 = arith.addf %253, %255 : vector<2x64xf32>
    %257 = vector.extract_strided_slice %256 {offsets = [0, 0], sizes = [2, 16], strides = [1, 1]} : vector<2x64xf32> to vector<2x16xf32>
    %258 = arith.negf %257 : vector<2x16xf32>
    %259 = math.exp %258 : vector<2x16xf32>
    %cst_74 = arith.constant 1.000000e+00 : f32
    %260 = vector.broadcast %cst_74 : f32 to vector<2x16xf32>
    %261 = arith.addf %260, %259 : vector<2x16xf32>
    %262 = arith.divf %260, %261 : vector<2x16xf32>
    %263 = vector.extract_strided_slice %256 {offsets = [0, 16], sizes = [2, 16], strides = [1, 1]} : vector<2x64xf32> to vector<2x16xf32>
    %264 = arith.negf %263 : vector<2x16xf32>
    %265 = math.exp %264 : vector<2x16xf32>
    %cst_75 = arith.constant 1.000000e+00 : f32
    %266 = vector.broadcast %cst_75 : f32 to vector<2x16xf32>
    %267 = arith.addf %266, %265 : vector<2x16xf32>
    %268 = arith.divf %266, %267 : vector<2x16xf32>
    %269 = vector.extract_strided_slice %256 {offsets = [0, 32], sizes = [2, 16], strides = [1, 1]} : vector<2x64xf32> to vector<2x16xf32>
    %270 = math.tanh %269 : vector<2x16xf32>
    %271 = vector.extract_strided_slice %256 {offsets = [0, 48], sizes = [2, 16], strides = [1, 1]} : vector<2x64xf32> to vector<2x16xf32>
    %272 = arith.negf %271 : vector<2x16xf32>
    %273 = math.exp %272 : vector<2x16xf32>
    %cst_76 = arith.constant 1.000000e+00 : f32
    %274 = vector.broadcast %cst_76 : f32 to vector<2x16xf32>
    %275 = arith.addf %274, %273 : vector<2x16xf32>
    %276 = arith.divf %274, %275 : vector<2x16xf32>
    %277 = arith.mulf %268, %245 : vector<2x16xf32>
    %278 = arith.mulf %262, %270 : vector<2x16xf32>
    %279 = arith.addf %277, %278 : vector<2x16xf32>
    %280 = math.tanh %279 : vector<2x16xf32>
    %281 = arith.mulf %276, %280 : vector<2x16xf32>
    %c2_i32_77 = arith.constant 2 : i32
    %282 = arith.muli %c7_i32, %c2_i32_77 : i32
    %283 = arith.index_cast %282 : i32 to index
    %c0_78 = arith.constant 0 : index
    %284 = vector.load %arg6[%283, %c0_78] : memref<16x16xf32, #tpu.memory_space<vmem>>, vector<2x16xf32>
    tpu.vector_store %arg6[%283, %c0_78], %281 {strides = array<i32>} : memref<16x16xf32, #tpu.memory_space<vmem>>, vector<2x16xf32>,
    %c8_i32 = arith.constant 8 : i32
    %c0_79 = arith.constant 0 : index
    %c0_80 = arith.constant 0 : index
    %285 = vector.load %arg8[%c0_79, %c0_80] : memref<2x16xf32, #tpu.memory_space<vmem>>, vector<2x16xf32>
    tpu.vector_store %arg8[%c0_79, %c0_80], %281 {strides = array<i32>} : memref<2x16xf32, #tpu.memory_space<vmem>>, vector<2x16xf32>,
    %c0_81 = arith.constant 0 : index
    %c0_82 = arith.constant 0 : index
    %286 = vector.load %arg9[%c0_81, %c0_82] : memref<2x16xf32, #tpu.memory_space<vmem>>, vector<2x16xf32>
    tpu.vector_store %arg9[%c0_81, %c0_82], %279 {strides = array<i32>} : memref<2x16xf32, #tpu.memory_space<vmem>>, vector<2x16xf32>,
    return
  }
  func.func @transform_0(%arg0: i32, %arg1: i32) -> (i32, i32) {
    %c1_i32 = arith.constant 1 : i32
    %0 = arith.muli %arg0, %c1_i32 : i32
    %1 = arith.addi %0, %arg1 : i32
    %c0_i32 = arith.constant 0 : i32
    %c0_i32_0 = arith.constant 0 : i32
    return %1, %c0_i32 : i32, i32
  }
  func.func @transform_1(%arg0: i32, %arg1: i32) -> (i32, i32) {
    %c0_i32 = arith.constant 0 : i32
    %c0_i32_0 = arith.constant 0 : i32
    %c0_i32_1 = arith.constant 0 : i32
    return %c0_i32, %c0_i32_0 : i32, i32
  }
  func.func @transform_2(%arg0: i32, %arg1: i32) -> (i32, i32) {
    %c0_i32 = arith.constant 0 : i32
    %c0_i32_0 = arith.constant 0 : i32
    %c0_i32_1 = arith.constant 0 : i32
    return %c0_i32, %c0_i32_0 : i32, i32
  }
  func.func @transform_3(%arg0: i32, %arg1: i32) -> (i32, i32) {
    %c0_i32 = arith.constant 0 : i32
    %c0_i32_0 = arith.constant 0 : i32
    %c0_i32_1 = arith.constant 0 : i32
    return %c0_i32, %c0_i32_0 : i32, i32
  }
  func.func @transform_4(%arg0: i32, %arg1: i32) -> (i32, i32) {
    %c1_i32 = arith.constant 1 : i32
    %0 = arith.muli %arg0, %c1_i32 : i32
    %1 = arith.addi %0, %arg1 : i32
    %c0_i32 = arith.constant 0 : i32
    %c0_i32_0 = arith.constant 0 : i32
    return %1, %c0_i32 : i32, i32
  }
}

</mosaic_0001>

<bundles_post_ra>
// kernel: dense_rnn_forward.3
= control target key start
LH: loop header
LB: loop body
LE: loop exit
PB: predicated region body
PF: predicated region fallthrough
CT: control target
= control target key end

     0   :  { %vm158_vm0 = vcmask 123904   ;;  %vm69_vm1 = vcmask 392192   ;;  %v1015_v2 = vmov 0.0   ;;  %vm1016_vm2 = vmmov 0   ;;  %s1017_s6 = smov 96   ;;  %s1018_s7 = smov 16   ;;  %s1229_s1 = inlined_call_operand.vmem [shape: f32[48,64], index: 1, kind: input, shape index: {}]   ;;  %s1230_s0 = inlined_call_operand.vmem [shape: f32[16,48], index: 0, kind: input, shape index: {}]   ;;  %s1231_s2 = inlined_call_operand.vmem [shape: bf16[16,64], index: 2, kind: input, shape index: {}]   ;;  %s1232_s3 = inlined_call_operand.vmem [shape: f32[1,64], index: 3, kind: input, shape index: {}]   ;;  %s1233_s4 = inlined_call_operand.vmem [shape: f32[16,16], index: 4, kind: output, shape index: {}]  }
   0x1   :  { %v61_v0 = vld [vmem:[%s1229_s1 + $0x28] sm:$0xff]  ;;  %v60_v1 = vld [vmem:[%s1229_s1 + $0x20] sm:$0xff]  ;;  %895 = vmatprep.subr.bf16.mxu1 %v1015_v2  ;;  %897 = vmatprep.mubr.msk.bf16.mxu1 %vm1016_vm2, %v1015_v2  ;;  %159 = vst.msk [vmem:[#allocation3] sm:$0x3] %vm158_vm0, %v1015_v2  ;;  %160 = vst.msk [vmem:[#allocation4] sm:$0x3] %vm158_vm0, %v1015_v2 }
   0x2   :  { %880 = vmatprep.subr.mxu0 %v61_v0  ;;  %v59_v3 = vld [vmem:[%s1229_s1 + $0x18] sm:$0xff]  ;;  %v54_v4 = vld [vmem:[%s1230_s0] sm:$0xff]  ;;  %v58_v6 = vld [vmem:[%s1229_s1 + $0x10] sm:$0xff]  ;;  %vm173_vm3 = vcmask 130048   ;;  %vm151_vm4 = vcmask 523264   ;;  %s1020_s8 = smov 80  }
   0x3   :  { %881 = vmatpush3.msra.mxu0 %v61_v0  ;;  %892 = vmatprep.mubr.msk.f32.mxu0 %vm69_vm1, %v54_v4  ;;  %v1070_v5 = vld [vmem:[%s1231_s2] sm:$0xff]   ;;  %v57_v7 = vld [vmem:[%s1229_s1 + $0x8] sm:$0xff]  ;;  %s1021_s9 = smov 112  }
   0x4   :  { %882 = vmatprep.subr.mxu0 %v60_v1  ;;  %896 = vmatpush3.bf16.msra.mxu1 %v1070_v5  ;;  %v56_v9 = vld [vmem:[%s1229_s1] sm:$0xff]  ;;  %v55_v11 = vld [vmem:[%s1230_s0 + $0x8] sm:$0xff] }
   0x5   :  { %883 = vmatpush3.msra.mxu0 %v60_v1  ;;  %901 = vmatprep.subr.bf16.mxu1 %v1015_v2  ;;  %v836_v13 = vld [vmem:[%s1232_s3] ss:$0 sm:$0xff]  ;;  %s1019_s3 = smov 32  }
   0x6   :  { %884 = vmatprep.subr.mxu0 %v59_v3 }
   0x7   :  { %885 = vmatpush3.msra.mxu0 %v59_v3 }
   0x8   :  { %886 = vmatprep.subr.mxu0 %v58_v6  ;;  %v163_v8 = vld [vmem:[#allocation3] sm:$0x3]  ;;  %v164_v24 = vld [vmem:[#allocation4] sm:$0x3] }
   0x9   :  { %887 = vmatpush3.msra.mxu0 %v58_v6  ;;  %v166_v10 = vpack.c.bf16 %v163_v8, %v163_v8 }
   0xa   :  { %888 = vmatprep.subr.mxu0 %v57_v7 }
   0xb   :  { %889 = vmatpush3.msra.mxu0 %v57_v7  ;;  %898 = vmatmul.mubr.msk.bf16.vlgmr.msra.gmra.mxu1 %vm173_vm3, %v166_v10 }
   0xc   :  { %890 = vmatprep.subr.mxu0 %v56_v9  ;;  %902 = vmatpush3.bf16.msra.mxu1 %v1070_v5 }
   0xd   :  { %891 = vmatpush3.msra.mxu0 %v56_v9  ;;  %903 = vmatprep.mubr.msk.bf16.mxu1 %vm1016_vm2, %v1015_v2 }
   0xe   :  { %893 = vmatmul.mubr.msk.f32.vlgmr.msra.gmra.mxu0 %vm69_vm1, %v55_v11  ;;  %907 = vmatprep.subr.bf16.mxu0 %v1015_v2 }
   0xf   :  { %908 = vmatpush3.bf16.msra.mxu0 %v1070_v5  ;;  %909 = vmatprep.mubr.msk.bf16.mxu0 %vm1016_vm2, %v1015_v2 }
  0x10   :  { %913 = vmatprep.subr.bf16.mxu1 %v1015_v2  ;;  %919 = vmatprep.subr.bf16.mxu0 %v1015_v2 }
  0xcb   :  { %v211_v12 = vpop.f32.mrf.mxu1 }
  0xcd   :  { %v899_v14 = vpop.f32.mrf.mxu1 }
  0xce   :  { %v894_v15 = vpop.f32.mrf.mxu0 }
  0xcf   :  { %v148_v16 = vadd.f32 %v894_v15, %v836_v13  ;;  %v214_v17 = vpop.f32.mrf.mxu1 }
  0xd0   :  { %v142_v18 = vpop.f32.mrf.mxu0 }
  0xd1   :  { %153 = vst.msk [vmem:[#allocation2 + $0x8] sm:$0xff] %vm151_vm4, %v148_v16  ;;  %v143_v19 = vadd.f32 %v836_v13, %v142_v18  ;;  %v900_v20 = vpop.f32.mrf.mxu1 }
  0xd3   :  { %152 = vst.msk [vmem:[#allocation2] sm:$0xff] %vm151_vm4, %v143_v19 }
  0xda   :  { %v165_v21 = vld [vmem:[#allocation2] sm:$0x3]  ;;  %v252_v40 = vld [vmem:[#allocation2 + $0x2] sm:$0x3]  ;;  %v330_v61 = vld [vmem:[#allocation2 + $0x4] sm:$0x3] }
  0xdb   :  { %v217_v22 = vadd.f32 %v211_v12, %v165_v21  ;;  %v408_v20 = vld [vmem:[#allocation2 + $0x6] sm:$0x3] }
  0xdd   :  { %951 = vtanh.f32 %v217_v22  ;;  %v841_v25 = vmul.f32 -1.442695, %v217_v22 }
  0xdf   :  { %953 = vpow2.f32 %v841_v25 }
  0xea   :  { %v952_v23 = vpop.eup %951 }
  0xeb   :  { %231 = vrot.lane.b32.xlu0 %v952_v23, %s1017_s6 }
  0xec   :  { %v954_v26 = vpop.eup %953 }
  0xed   :  { %v221_v27 = vadd.f32 1.0, %v954_v26 }
  0xef   :  { %226 = vrot.lane.b32.xlu0 %v164_v24, %s1018_s7  ;;  %955 = vrcp.f32 %v221_v27 }
  0xfc   :  { %v956_v28 = vpop.eup %955 }
 0x15d   :  { %v232_v29 = vpop.permute.xlu0 %231 }
 0x15e   :  { %v234_v30 = vmul.f32 %v956_v28, %v232_v29 }
 0x160   :  { %236 = vrot.lane.b32.xlu1 %v234_v30, %s1018_s7 }
 0x161   :  { %v227_v31 = vpop.permute.xlu0 %226 }
 0x162   :  { %v229_v32 = vmul.f32 %v956_v28, %v227_v31 }
 0x1d2   :  { %v237_v33 = vpop.permute.xlu1 %236 }
 0x1d3   :  { %v239_v34 = vadd.f32 %v237_v33, %v229_v32 }
 0x1d5   :  { %957 = vtanh.f32 %v239_v34 }
 0x1e2   :  { %v958_v35 = vpop.eup %957 }
 0x1e3   :  { %242 = vrot.lane.b32.xlu1 %v958_v35, %s1019_s3 }
 0x255   :  { %v243_v36 = vpop.permute.xlu1 %242 }
 0x256   :  { %v1104_v37 = vmul.f32 %v956_v28, %v243_v36 }
 0x258   :  { %v253_v38 = vpack.c.bf16 %v1104_v37, %v1104_v37 }
 0x25a   :  { %255 = vrot.lane.b32.xlu0 %v253_v38, %s1020_s8 }
 0x2cc   :  { %v256_v39 = vpop.permute.xlu0 %255 }
 0x2cd   :  { %904 = vmatmul.mubr.msk.bf16.vlgmr.msra.gmra.mxu1 %vm173_vm3, %v256_v39 }
 0x2ce   :  { %914 = vmatpush3.bf16.msra.mxu1 %v1070_v5  ;;  %915 = vmatprep.mubr.msk.bf16.mxu1 %vm1016_vm2, %v1015_v2 }
 0x2cf   :  { %925 = vmatprep.subr.bf16.mxu1 %v1015_v2 }
 0x38d   :  { %v294_v41 = vpop.f32.mrf.mxu1 }
 0x38e   :  { %v300_v42 = vadd.f32 %v294_v41, %v252_v40 }
 0x38f   :  { %v905_v43 = vpop.f32.mrf.mxu1 }
 0x390   :  { %959 = vtanh.f32 %v300_v42  ;;  %v843_v47 = vmul.f32 -1.442695, %v300_v42  ;;  %v486_v42 = vld [vmem:[#allocation2 + $0x8] sm:$0x3] }
 0x391   :  { %v297_v44 = vpop.f32.mrf.mxu1 }
 0x392   :  { %961 = vpow2.f32 %v843_v47 }
 0x393   :  { %v906_v45 = vpop.f32.mrf.mxu1 }
 0x39d   :  { %v960_v46 = vpop.eup %959 }
 0x39e   :  { %310 = vrot.lane.b32.xlu1 %v960_v46, %s1017_s6 }
 0x39f   :  { %v962_v48 = vpop.eup %961 }
 0x3a0   :  { %v304_v49 = vadd.f32 1.0, %v962_v48 }
 0x3a2   :  { %963 = vrcp.f32 %v304_v49 }
 0x3af   :  { %v964_v50 = vpop.eup %963 }
 0x3b0   :  { %v308_v53 = vmul.f32 %v964_v50, %v239_v34 }
 0x410   :  { %v311_v51 = vpop.permute.xlu1 %310 }
 0x411   :  { %v313_v52 = vmul.f32 %v964_v50, %v311_v51 }
 0x413   :  { %315 = vrot.lane.b32.xlu0 %v313_v52, %s1018_s7 }
 0x485   :  { %v316_v54 = vpop.permute.xlu0 %315 }
 0x486   :  { %v318_v55 = vadd.f32 %v316_v54, %v308_v53 }
 0x488   :  { %965 = vtanh.f32 %v318_v55 }
 0x495   :  { %v966_v56 = vpop.eup %965 }
 0x496   :  { %321 = vrot.lane.b32.xlu1 %v966_v56, %s1019_s3 }
 0x508   :  { %v322_v57 = vpop.permute.xlu1 %321 }
 0x509   :  { %v1117_v58 = vmul.f32 %v964_v50, %v322_v57 }
 0x50b   :  { %v331_v59 = vpack.c.bf16 %v1117_v58, %v1117_v58 }
 0x50d   :  { %333 = vrot.lane.b32.xlu0 %v331_v59, %s1020_s8 }
 0x57f   :  { %v334_v60 = vpop.permute.xlu0 %333 }
 0x580   :  { %910 = vmatmul.mubr.msk.bf16.vlgmr.msra.gmra.mxu0 %vm173_vm3, %v334_v60 }
 0x581   :  { %920 = vmatpush3.bf16.msra.mxu0 %v1070_v5  ;;  %921 = vmatprep.mubr.msk.bf16.mxu0 %vm1016_vm2, %v1015_v2 }
 0x582   :  { %931 = vmatprep.subr.bf16.mxu0 %v1015_v2 }
 0x640   :  { %v372_v62 = vpop.f32.mrf.mxu0 }
 0x641   :  { %v378_v63 = vadd.f32 %v372_v62, %v330_v61 }
 0x642   :  { %v911_v0 = vpop.f32.mrf.mxu0 }
 0x643   :  { %967 = vtanh.f32 %v378_v63  ;;  %v845_v6 = vmul.f32 -1.442695, %v378_v63  ;;  %v564_v0 = vld [vmem:[#allocation2 + $0xa] sm:$0x3] }
 0x644   :  { %v375_v1 = vpop.f32.mrf.mxu0 }
 0x645   :  { %969 = vpow2.f32 %v845_v6 }
 0x646   :  { %v912_v3 = vpop.f32.mrf.mxu0 }
 0x650   :  { %v968_v4 = vpop.eup %967 }
 0x651   :  { %388 = vrot.lane.b32.xlu1 %v968_v4, %s1017_s6 }
 0x652   :  { %v970_v7 = vpop.eup %969 }
 0x653   :  { %v382_v8 = vadd.f32 1.0, %v970_v7 }
 0x655   :  { %971 = vrcp.f32 %v382_v8 }
 0x662   :  { %v972_v9 = vpop.eup %971 }
 0x663   :  { %v386_v12 = vmul.f32 %v972_v9, %v318_v55 }
 0x6c3   :  { %v389_v10 = vpop.permute.xlu1 %388 }
 0x6c4   :  { %v391_v11 = vmul.f32 %v972_v9, %v389_v10 }
 0x6c6   :  { %393 = vrot.lane.b32.xlu0 %v391_v11, %s1018_s7 }
 0x738   :  { %v394_v13 = vpop.permute.xlu0 %393 }
 0x739   :  { %v396_v14 = vadd.f32 %v394_v13, %v386_v12 }
 0x73b   :  { %973 = vtanh.f32 %v396_v14 }
 0x748   :  { %v974_v15 = vpop.eup %973 }
 0x749   :  { %399 = vrot.lane.b32.xlu1 %v974_v15, %s1019_s3 }
 0x7bb   :  { %v400_v16 = vpop.permute.xlu1 %399 }
 0x7bc   :  { %v1130_v17 = vmul.f32 %v972_v9, %v400_v16 }
 0x7be   :  { %v409_v18 = vpack.c.bf16 %v1130_v17, %v1130_v17 }
 0x7c0   :  { %411 = vrot.lane.b32.xlu0 %v409_v18, %s1020_s8 }
 0x832   :  { %v412_v19 = vpop.permute.xlu0 %411 }
 0x833   :  { %916 = vmatmul.mubr.msk.bf16.vlgmr.msra.gmra.mxu1 %vm173_vm3, %v412_v19 }
 0x834   :  { %926 = vmatpush3.bf16.msra.mxu1 %v1070_v5  ;;  %927 = vmatprep.mubr.msk.bf16.mxu1 %vm1016_vm2, %v1015_v2 }
 0x835   :  { %937 = vmatprep.subr.bf16.mxu1 %v1015_v2 }
 0x8f3   :  { %v450_v21 = vpop.f32.mrf.mxu1 }
 0x8f4   :  { %v456_v22 = vadd.f32 %v450_v21, %v408_v20 }
 0x8f5   :  { %v917_v23 = vpop.f32.mrf.mxu1 }
 0x8f6   :  { %975 = vtanh.f32 %v456_v22  ;;  %v847_v27 = vmul.f32 -1.442695, %v456_v22  ;;  %v642_v22 = vld [vmem:[#allocation2 + $0xc] sm:$0x3] }
 0x8f7   :  { %v453_v24 = vpop.f32.mrf.mxu1 }
 0x8f8   :  { %977 = vpow2.f32 %v847_v27 }
 0x8f9   :  { %v918_v25 = vpop.f32.mrf.mxu1 }
 0x903   :  { %v976_v26 = vpop.eup %975 }
 0x904   :  { %466 = vrot.lane.b32.xlu1 %v976_v26, %s1017_s6 }
 0x905   :  { %v978_v28 = vpop.eup %977 }
 0x906   :  { %v460_v29 = vadd.f32 1.0, %v978_v28 }
 0x908   :  { %979 = vrcp.f32 %v460_v29 }
 0x915   :  { %v980_v30 = vpop.eup %979 }
 0x916   :  { %v464_v33 = vmul.f32 %v980_v30, %v396_v14 }
 0x976   :  { %v467_v31 = vpop.permute.xlu1 %466 }
 0x977   :  { %v469_v32 = vmul.f32 %v980_v30, %v467_v31 }
 0x979   :  { %471 = vrot.lane.b32.xlu0 %v469_v32, %s1018_s7 }
 0x9eb   :  { %v472_v34 = vpop.permute.xlu0 %471 }
 0x9ec   :  { %v474_v35 = vadd.f32 %v472_v34, %v464_v33 }
 0x9ee   :  { %981 = vtanh.f32 %v474_v35 }
 0x9fb   :  { %v982_v36 = vpop.eup %981 }
 0x9fc   :  { %477 = vrot.lane.b32.xlu1 %v982_v36, %s1019_s3 }
 0xa6e   :  { %v478_v38 = vpop.permute.xlu1 %477 }
 0xa6f   :  { %v1143_v39 = vmul.f32 %v980_v30, %v478_v38 }
 0xa71   :  { %v487_v40 = vpack.c.bf16 %v1143_v39, %v1143_v39 }
 0xa73   :  { %489 = vrot.lane.b32.xlu0 %v487_v40, %s1020_s8 }
 0xae5   :  { %v490_v41 = vpop.permute.xlu0 %489 }
 0xae6   :  { %922 = vmatmul.mubr.msk.bf16.vlgmr.msra.gmra.mxu0 %vm173_vm3, %v490_v41 }
 0xae7   :  { %932 = vmatpush3.bf16.msra.mxu0 %v1070_v5  ;;  %933 = vmatprep.mubr.msk.bf16.mxu0 %vm1016_vm2, %v1015_v2 }
 0xba6   :  { %v528_v43 = vpop.f32.mrf.mxu0 }
 0xba7   :  { %v534_v44 = vadd.f32 %v528_v43, %v486_v42 }
 0xba8   :  { %v923_v45 = vpop.f32.mrf.mxu0 }
 0xba9   :  { %983 = vtanh.f32 %v534_v44  ;;  %v849_v49 = vmul.f32 -1.442695, %v534_v44  ;;  %v720_v45 = vld [vmem:[#allocation2 + $0xe] sm:$0x3] }
 0xbaa   :  { %v531_v46 = vpop.f32.mrf.mxu0 }
 0xbab   :  { %985 = vpow2.f32 %v849_v49 }
 0xbac   :  { %v924_v47 = vpop.f32.mrf.mxu0 }
 0xbb6   :  { %v984_v48 = vpop.eup %983 }
 0xbb7   :  { %544 = vrot.lane.b32.xlu1 %v984_v48, %s1017_s6 }
 0xbb8   :  { %v986_v50 = vpop.eup %985 }
 0xbb9   :  { %v538_v51 = vadd.f32 1.0, %v986_v50 }
 0xbbb   :  { %987 = vrcp.f32 %v538_v51 }
 0xbc8   :  { %v988_v52 = vpop.eup %987 }
 0xbc9   :  { %v542_v55 = vmul.f32 %v988_v52, %v474_v35 }
 0xc29   :  { %v545_v53 = vpop.permute.xlu1 %544 }
 0xc2a   :  { %v547_v54 = vmul.f32 %v988_v52, %v545_v53 }
 0xc2c   :  { %549 = vrot.lane.b32.xlu0 %v547_v54, %s1018_s7 }
 0xc9e   :  { %v550_v56 = vpop.permute.xlu0 %549 }
 0xc9f   :  { %v552_v57 = vadd.f32 %v550_v56, %v542_v55 }
 0xca1   :  { %989 = vtanh.f32 %v552_v57 }
 0xcae   :  { %v990_v59 = vpop.eup %989 }
 0xcaf   :  { %555 = vrot.lane.b32.xlu1 %v990_v59, %s1019_s3 }
 0xd21   :  { %v556_v60 = vpop.permute.xlu1 %555 }
 0xd22   :  { %v1155_v61 = vmul.f32 %v988_v52, %v556_v60 }
 0xd24   :  { %v565_v62 = vpack.c.bf16 %v1155_v61, %v1155_v61 }
 0xd26   :  { %567 = vrot.lane.b32.xlu0 %v565_v62, %s1020_s8 }
 0xd98   :  { %v568_v63 = vpop.permute.xlu0 %567 }
 0xd99   :  { %928 = vmatmul.mubr.msk.bf16.vlgmr.msra.gmra.mxu1 %vm173_vm3, %v568_v63 }
 0xd9a   :  { %938 = vmatpush3.bf16.msra.mxu1 %v1070_v5  ;;  %939 = vmatprep.mubr.msk.bf16.mxu1 %vm1016_vm2, %v1015_v2 }
 0xe59   :  { %v606_v1 = vpop.f32.mrf.mxu1 }
 0xe5a   :  { %v612_v3 = vadd.f32 %v606_v1, %v564_v0 }
 0xe5b   :  { %v929_v4 = vpop.f32.mrf.mxu1 }
 0xe5c   :  { %991 = vtanh.f32 %v612_v3  ;;  %v851_v9 = vmul.f32 -1.442695, %v612_v3 }
 0xe5d   :  { %v609_v6 = vpop.f32.mrf.mxu1 }
 0xe5e   :  { %993 = vpow2.f32 %v851_v9 }
 0xe5f   :  { %v930_v7 = vpop.f32.mrf.mxu1 }
 0xe69   :  { %v992_v8 = vpop.eup %991 }
 0xe6a   :  { %622 = vrot.lane.b32.xlu1 %v992_v8, %s1017_s6 }
 0xe6b   :  { %v994_v10 = vpop.eup %993 }
 0xe6c   :  { %v616_v11 = vadd.f32 1.0, %v994_v10 }
 0xe6e   :  { %995 = vrcp.f32 %v616_v11 }
 0xe7b   :  { %v996_v12 = vpop.eup %995 }
 0xe7c   :  { %v620_v2 = vmul.f32 %v996_v12, %v552_v57 }
 0xedc   :  { %v623_v5 = vpop.permute.xlu1 %622 }
 0xedd   :  { %v625_v13 = vmul.f32 %v996_v12, %v623_v5 }
 0xedf   :  { %627 = vrot.lane.b32.xlu0 %v625_v13, %s1018_s7 }
 0xf51   :  { %v628_v14 = vpop.permute.xlu0 %627 }
 0xf52   :  { %v630_v15 = vadd.f32 %v628_v14, %v620_v2 }
 0xf54   :  { %997 = vtanh.f32 %v630_v15 }
 0xf61   :  { %v998_v16 = vpop.eup %997 }
 0xf62   :  { %633 = vrot.lane.b32.xlu1 %v998_v16, %s1019_s3 }
 0xfd4   :  { %v634_v18 = vpop.permute.xlu1 %633 }
 0xfd5   :  { %v1167_v19 = vmul.f32 %v996_v12, %v634_v18 }
 0xfd7   :  { %v643_v20 = vpack.c.bf16 %v1167_v19, %v1167_v19 }
 0xfd9   :  { %645 = vrot.lane.b32.xlu0 %v643_v20, %s1020_s8 }
0x104b   :  { %v646_v21 = vpop.permute.xlu0 %645 }
0x104c   :  { %934 = vmatmul.mubr.msk.bf16.vlgmr.msra.gmra.mxu0 %vm173_vm3, %v646_v21 }
0x110c   :  { %v684_v23 = vpop.f32.mrf.mxu0 }
0x110d   :  { %v690_v24 = vadd.f32 %v684_v23, %v642_v22 }
0x110e   :  { %v935_v25 = vpop.f32.mrf.mxu0 }
0x110f   :  { %999 = vtanh.f32 %v690_v24  ;;  %v853_v29 = vmul.f32 -1.442695, %v690_v24 }
0x1110   :  { %v687_v26 = vpop.f32.mrf.mxu0 }
0x1111   :  { %1001 = vpow2.f32 %v853_v29 }
0x1112   :  { %v936_v27 = vpop.f32.mrf.mxu0 }
0x111c   :  { %v1000_v28 = vpop.eup %999 }
0x111d   :  { %700 = vrot.lane.b32.xlu1 %v1000_v28, %s1017_s6 }
0x111e   :  { %v1002_v30 = vpop.eup %1001 }
0x111f   :  { %v694_v31 = vadd.f32 1.0, %v1002_v30 }
0x1121   :  { %1003 = vrcp.f32 %v694_v31 }
0x112e   :  { %v1004_v32 = vpop.eup %1003 }
0x112f   :  { %v698_v35 = vmul.f32 %v1004_v32, %v630_v15 }
0x118f   :  { %v701_v33 = vpop.permute.xlu1 %700 }
0x1190   :  { %v703_v34 = vmul.f32 %v1004_v32, %v701_v33 }
0x1192   :  { %705 = vrot.lane.b32.xlu0 %v703_v34, %s1018_s7 }
0x1204   :  { %v706_v36 = vpop.permute.xlu0 %705 }
0x1205   :  { %v708_v38 = vadd.f32 %v706_v36, %v698_v35 }
0x1207   :  { %1005 = vtanh.f32 %v708_v38 }
0x1214   :  { %v1006_v40 = vpop.eup %1005 }
0x1215   :  { %711 = vrot.lane.b32.xlu1 %v1006_v40, %s1019_s3 }
0x1287   :  { %v712_v41 = vpop.permute.xlu1 %711 }
0x1288   :  { %v714_v42 = vmul.f32 %v1004_v32, %v712_v41 }
0x128a   :  { %v721_v43 = vpack.c.bf16 %v714_v42, %v714_v42 }
0x128c   :  { %723 = vrot.lane.b32.xlu0 %v721_v43, %s1020_s8 }
0x12fe   :  { %v724_v44 = vpop.permute.xlu0 %723 }
0x12ff   :  { %940 = vmatmul.mubr.msk.bf16.vlgmr.msra.gmra.mxu1 %vm173_vm3, %v724_v44 }
0x13bf   :  { %v762_v46 = vpop.f32.mrf.mxu1 }
0x13c0   :  { %v768_v47 = vadd.f32 %v762_v46, %v720_v45 }
0x13c1   :  { %v941_v48 = vpop.f32.mrf.mxu1 }
0x13c2   :  { %1007 = vtanh.f32 %v768_v47  ;;  %v855_v52 = vmul.f32 -1.442695, %v768_v47 }
0x13c3   :  { %v765_v49 = vpop.f32.mrf.mxu1 }
0x13c4   :  { %1009 = vpow2.f32 %v855_v52 }
0x13c5   :  { %v942_v50 = vpop.f32.mrf.mxu1 }
0x13cf   :  { %v1008_v51 = vpop.eup %1007 }
0x13d0   :  { %778 = vrot.lane.b32.xlu1 %v1008_v51, %s1017_s6 }
0x13d1   :  { %v1010_v53 = vpop.eup %1009 }
0x13d2   :  { %v772_v54 = vadd.f32 1.0, %v1010_v53 }
0x13d4   :  { %1011 = vrcp.f32 %v772_v54 }
0x13e1   :  { %v1012_v55 = vpop.eup %1011 }
0x13e2   :  { %v776_v59 = vmul.f32 %v1012_v55, %v708_v38 }
0x1442   :  { %v779_v56 = vpop.permute.xlu1 %778 }
0x1443   :  { %v781_v57 = vmul.f32 %v1012_v55, %v779_v56 }
0x1445   :  { %783 = vrot.lane.b32.xlu0 %v781_v57, %s1018_s7 }
0x1449   :  { %247 = vrot.lane.b32.xlu0 %v1104_v37, %s1020_s8 }
0x144d   :  { %404 = vrot.lane.b32.xlu0 %v1130_v17, %s1020_s8 }
0x1451   :  { %560 = vrot.lane.b32.xlu0 %v1155_v61, %s1020_s8 }
0x1455   :  { %716 = vrot.lane.b32.xlu0 %v714_v42, %s1020_s8 }
0x14b7   :  { %v784_v60 = vpop.permute.xlu0 %783 }
0x14b8   :  { %v786_v62 = vadd.f32 %v784_v60, %v776_v59 }
0x14ba   :  { %1013 = vtanh.f32 %v786_v62  ;;  %800 = vrot.lane.b32.xlu0 %v786_v62, %s1021_s9 }
0x14bb   :  { %v248_v63 = vpop.permute.xlu0 %247 }
0x14bc   :  { %251 = vst.msk [vmem:[%s1233_s4] sm:$0x3] %vm158_vm0, %v248_v63 }
0x14bf   :  { %v405_v37 = vpop.permute.xlu0 %404 }
0x14c0   :  { %407 = vst.msk [vmem:[%s1233_s4 + $0x4] sm:$0x3] %vm158_vm0, %v405_v37 }
0x14c3   :  { %v561_v17 = vpop.permute.xlu0 %560 }
0x14c4   :  { %563 = vst.msk [vmem:[%s1233_s4 + $0x8] sm:$0x3] %vm158_vm0, %v561_v17 }
0x14c7   :  { %v1014_v61 = vpop.eup %1013  ;;  %v717_v0 = vpop.permute.xlu0 %716 }
0x14c8   :  { %719 = vst.msk [vmem:[%s1233_s4 + $0xc] sm:$0x3] %vm158_vm0, %v717_v0  ;;  %789 = vrot.lane.b32.xlu1 %v1014_v61, %s1019_s3 }
0x14cc   :  { %326 = vrot.lane.b32.xlu1 %v1117_v58, %s1020_s8 }
0x14d0   :  { %482 = vrot.lane.b32.xlu1 %v1143_v39, %s1020_s8 }
0x14d4   :  { %638 = vrot.lane.b32.xlu1 %v1167_v19, %s1020_s8 }
0x152c   :  { %v801_v1 = vpop.permute.xlu0 %800 }
0x152d   :  { %803 = vst.msk [vmem:[#allocation4] sm:$0x3] %vm158_vm0, %v801_v1 }
0x153a   :  { %v790_v3 = vpop.permute.xlu1 %789 }
0x153b   :  { %v792_v4 = vmul.f32 %v1012_v55, %v790_v3 }
0x153d   :  { %794 = vrot.lane.b32.xlu1 %v792_v4, %s1020_s8 }
0x153e   :  { %v327_v6 = vpop.permute.xlu1 %326 }
0x153f   :  { %329 = vst.msk [vmem:[%s1233_s4 + $0x2] sm:$0x3] %vm158_vm0, %v327_v6 }
0x1542   :  { %v483_v58 = vpop.permute.xlu1 %482 }
0x1543   :  { %485 = vst.msk [vmem:[%s1233_s4 + $0x6] sm:$0x3] %vm158_vm0, %v483_v58 }
0x1546   :  { %v639_v39 = vpop.permute.xlu1 %638 }
0x1547   :  { %641 = vst.msk [vmem:[%s1233_s4 + $0xa] sm:$0x3] %vm158_vm0, %v639_v39 }
0x15af   :  { %v795_v7 = vpop.permute.xlu1 %794 }
0x15b0   :  { %797 = vst.msk [vmem:[%s1233_s4 + $0xe] sm:$0x3] %vm158_vm0, %v795_v7  ;;  %798 = vst.msk [vmem:[#allocation3] sm:$0x3] %vm158_vm0, %v795_v7 }

// kernel: dense_rnn_forward.2
= control target key start
LH: loop header
LB: loop body
LE: loop exit
PB: predicated region body
PF: predicated region fallthrough
CT: control target
= control target key end

     0   :  { %9 = vsyncpa [#allocation6], 0  ;;  %s1047_s15 = smov [#allocation5]   ;;  %s1249_s0 = inlined_call_operand.vmem [shape: f32[16,32], index: 0, kind: input, shape index: {}]   ;;  %s1250_s1 = inlined_call_operand.hbm [shape: f32[32,64], index: 1, kind: input, shape index: {}]   ;;  %s1251_s2 = inlined_call_operand.vmem [shape: bf16[16,64], index: 2, kind: input, shape index: {}]   ;;  %s1252_s3 = inlined_call_operand.vmem [shape: f32[1,64], index: 3, kind: input, shape index: {}]   ;;  %s1253_s4 = inlined_call_operand.vmem [shape: f32[16,16], index: 4, kind: output, shape index: {}]  }
   0x1   :  { %s25_s16 = sshll.u32 %s1047_s15, 4  ;;  %s26_s16 = int_to_ptr.vmem [resolvable:$true] %s25_s16 }
   0x2   :  { %s1033_s17 = scalar_lea.vmem %s26_s16, 512  ;;  %p1038_p1 = scmp.lt.s32.totalorder %s26_s16, %s26_s16 }
   0x3   :  { %p1034_p0 = scmp.ne.s32.totalorder %s26_s16, %s1033_s17  ;;  %p1039_p2 = scmp.lt.s32.totalorder %s1033_s17, %s1033_s17 }
   0x5   :  { %p1040_p3 = por %p1039_p2, %p1038_p1 }
   0x7   :  { %p1041_p4 = pnand %p1040_p3, %p1034_p0 }
   0x9   :  { %1044 = shalt.err (!%p1041_p4)
}
   0xa   :  { %s1048_s18 = smov 128   ;;  %s1049_s19 = smov 8  }
   0xb   :  { %31 = dma.hbm_to_vmem [thread:$0]  %s1250_s1, 512, %s26_s16, [#allocation6], %s1048_s18, %s1048_s18, %s1049_s19  }
   0xc   :  { %1045 = dma.done.wait [#allocation6], 512  }
   0xd   :  { %1046 = vsyncadd [#allocation6], 4294966784  ;;  %vm170_vm0 = vcmask 123904   ;;  %v1050_v0 = vmov 0.0   ;;  %vm1051_vm1 = vmmov 0   ;;  %vm81_vm2 = vcmask 261120  }
   0xe   :  { %902 = vmatprep.subr.bf16.mxu1 %v1050_v0  ;;  %904 = vmatprep.mubr.msk.bf16.mxu1 %vm1051_vm1, %v1050_v0  ;;  %171 = vst.msk [vmem:[#allocation3] sm:$0x3] %vm170_vm0, %v1050_v0  ;;  %172 = vst.msk [vmem:[#allocation4] sm:$0x3] %vm170_vm0, %v1050_v0  ;;  %v73_v1 = vld [vmem:[#allocation5 + $0x18] sm:$0xff]  ;;  %v72_v2 = vld [vmem:[#allocation5 + $0x10] sm:$0xff] }
   0xf   :  { %891 = vmatprep.subr.mxu0 %v73_v1  ;;  %v71_v3 = vld [vmem:[#allocation5 + $0x8] sm:$0xff]  ;;  %v70_v7 = vld [vmem:[#allocation5] sm:$0xff]  ;;  %vm185_vm3 = vcmask 130048   ;;  %v69_v9 = vld [vmem:[%s1249_s0 + $0x8] sm:$0xff]  ;;  %vm163_vm4 = vcmask 523264   ;;  %s1052_s27 = smov 96  }
  0x10   :  { %v68_v4 = vld [vmem:[%s1249_s0] sm:$0xff]  ;;  %892 = vmatpush3.msra.mxu0 %v73_v1  ;;  %s1054_s28 = smov 32   ;;  %s1055_s29 = smov 80  }
  0x11   :  { %899 = vmatprep.mubr.msk.f32.mxu0 %vm81_vm2, %v68_v4  ;;  %v1099_v5 = vld [vmem:[%s1251_s2] sm:$0xff]   ;;  %893 = vmatprep.subr.mxu0 %v72_v2  ;;  %s1056_s30 = smov 112  }
  0x12   :  { %894 = vmatpush3.msra.mxu0 %v72_v2  ;;  %903 = vmatpush3.bf16.msra.mxu1 %v1099_v5  ;;  %v849_v10 = vld [vmem:[%s1252_s3] ss:$0 sm:$0xff]  ;;  %s1053_s3 = smov 16  }
  0x13   :  { %895 = vmatprep.subr.mxu0 %v71_v3  ;;  %914 = vmatprep.subr.bf16.mxu1 %v1050_v0 }
  0x14   :  { %896 = vmatpush3.msra.mxu0 %v71_v3 }
  0x15   :  { %v175_v6 = vld [vmem:[#allocation3] sm:$0x3]  ;;  %897 = vmatprep.subr.mxu0 %v70_v7  ;;  %v176_v22 = vld [vmem:[#allocation4] sm:$0x3] }
  0x16   :  { %v178_v8 = vpack.c.bf16 %v175_v6, %v175_v6  ;;  %898 = vmatpush3.msra.mxu0 %v70_v7 }
  0x17   :  { %900 = vmatmul.mubr.msk.f32.vlgmr.msra.gmra.mxu0 %vm81_vm2, %v69_v9  ;;  %908 = vmatprep.subr.bf16.mxu0 %v1050_v0 }
  0x18   :  { %905 = vmatmul.mubr.msk.bf16.vlgmr.msra.gmra.mxu1 %vm185_vm3, %v178_v8  ;;  %909 = vmatpush3.bf16.msra.mxu0 %v1099_v5 }
  0x19   :  { %915 = vmatpush3.bf16.msra.mxu1 %v1099_v5  ;;  %910 = vmatprep.mubr.msk.bf16.mxu0 %vm1051_vm1, %v1050_v0 }
  0x1a   :  { %916 = vmatprep.mubr.msk.bf16.mxu1 %vm1051_vm1, %v1050_v0  ;;  %920 = vmatprep.subr.bf16.mxu0 %v1050_v0 }
  0x1b   :  { %926 = vmatprep.subr.bf16.mxu1 %v1050_v0 }
  0xd7   :  { %v901_v12 = vpop.f32.mrf.mxu0 }
  0xd8   :  { %v223_v11 = vpop.f32.mrf.mxu1  ;;  %v160_v14 = vadd.f32 %v901_v12, %v849_v10 }
  0xd9   :  { %v154_v15 = vpop.f32.mrf.mxu0 }
  0xda   :  { %v906_v13 = vpop.f32.mrf.mxu1  ;;  %165 = vst.msk [vmem:[#allocation2 + $0x8] sm:$0xff] %vm163_vm4, %v160_v14  ;;  %v155_v17 = vadd.f32 %v849_v10, %v154_v15 }
  0xdc   :  { %v226_v16 = vpop.f32.mrf.mxu1  ;;  %164 = vst.msk [vmem:[#allocation2] sm:$0xff] %vm163_vm4, %v155_v17 }
  0xde   :  { %v907_v18 = vpop.f32.mrf.mxu1 }
  0xe3   :  { %v177_v19 = vld [vmem:[#allocation2] sm:$0x3]  ;;  %v264_v38 = vld [vmem:[#allocation2 + $0x2] sm:$0x3]  ;;  %v342_v59 = vld [vmem:[#allocation2 + $0x4] sm:$0x3] }
  0xe4   :  { %v229_v20 = vadd.f32 %v223_v11, %v177_v19  ;;  %v420_v18 = vld [vmem:[#allocation2 + $0x6] sm:$0x3] }
  0xe6   :  { %961 = vtanh.f32 %v229_v20  ;;  %v854_v23 = vmul.f32 -1.442695, %v229_v20 }
  0xe8   :  { %963 = vpow2.f32 %v854_v23 }
  0xf3   :  { %v962_v21 = vpop.eup %961 }
  0xf4   :  { %243 = vrot.lane.b32.xlu0 %v962_v21, %s1052_s27 }
  0xf5   :  { %v964_v24 = vpop.eup %963 }
  0xf6   :  { %v233_v25 = vadd.f32 1.0, %v964_v24 }
  0xf8   :  { %238 = vrot.lane.b32.xlu0 %v176_v22, %s1053_s3  ;;  %965 = vrcp.f32 %v233_v25 }
 0x105   :  { %v966_v26 = vpop.eup %965 }
 0x166   :  { %v244_v27 = vpop.permute.xlu0 %243 }
 0x167   :  { %v246_v28 = vmul.f32 %v966_v26, %v244_v27 }
 0x169   :  { %248 = vrot.lane.b32.xlu1 %v246_v28, %s1053_s3 }
 0x16a   :  { %v239_v29 = vpop.permute.xlu0 %238 }
 0x16b   :  { %v241_v30 = vmul.f32 %v966_v26, %v239_v29 }
 0x1db   :  { %v249_v31 = vpop.permute.xlu1 %248 }
 0x1dc   :  { %v251_v32 = vadd.f32 %v249_v31, %v241_v30 }
 0x1de   :  { %967 = vtanh.f32 %v251_v32 }
 0x1eb   :  { %v968_v33 = vpop.eup %967 }
 0x1ec   :  { %254 = vrot.lane.b32.xlu1 %v968_v33, %s1054_s28 }
 0x25e   :  { %v255_v34 = vpop.permute.xlu1 %254 }
 0x25f   :  { %v1124_v35 = vmul.f32 %v966_v26, %v255_v34 }
 0x261   :  { %v265_v36 = vpack.c.bf16 %v1124_v35, %v1124_v35 }
 0x263   :  { %267 = vrot.lane.b32.xlu0 %v265_v36, %s1055_s29 }
 0x2d5   :  { %v268_v37 = vpop.permute.xlu0 %267 }
 0x2d6   :  { %911 = vmatmul.mubr.msk.bf16.vlgmr.msra.gmra.mxu0 %vm185_vm3, %v268_v37 }
 0x2d7   :  { %921 = vmatpush3.bf16.msra.mxu0 %v1099_v5  ;;  %922 = vmatprep.mubr.msk.bf16.mxu0 %vm1051_vm1, %v1050_v0 }
 0x2d8   :  { %932 = vmatprep.subr.bf16.mxu0 %v1050_v0 }
 0x396   :  { %v306_v39 = vpop.f32.mrf.mxu0 }
 0x397   :  { %v312_v40 = vadd.f32 %v306_v39, %v264_v38 }
 0x398   :  { %v912_v41 = vpop.f32.mrf.mxu0 }
 0x399   :  { %969 = vtanh.f32 %v312_v40  ;;  %v856_v45 = vmul.f32 -1.442695, %v312_v40  ;;  %v498_v40 = vld [vmem:[#allocation2 + $0x8] sm:$0x3] }
 0x39a   :  { %v309_v42 = vpop.f32.mrf.mxu0 }
 0x39b   :  { %971 = vpow2.f32 %v856_v45 }
 0x39c   :  { %v913_v43 = vpop.f32.mrf.mxu0 }
 0x3a6   :  { %v970_v44 = vpop.eup %969 }
 0x3a7   :  { %322 = vrot.lane.b32.xlu1 %v970_v44, %s1052_s27 }
 0x3a8   :  { %v972_v46 = vpop.eup %971 }
 0x3a9   :  { %v316_v47 = vadd.f32 1.0, %v972_v46 }
 0x3ab   :  { %973 = vrcp.f32 %v316_v47 }
 0x3b8   :  { %v974_v48 = vpop.eup %973 }
 0x3b9   :  { %v320_v51 = vmul.f32 %v974_v48, %v251_v32 }
 0x419   :  { %v323_v49 = vpop.permute.xlu1 %322 }
 0x41a   :  { %v325_v50 = vmul.f32 %v974_v48, %v323_v49 }
 0x41c   :  { %327 = vrot.lane.b32.xlu0 %v325_v50, %s1053_s3 }
 0x48e   :  { %v328_v52 = vpop.permute.xlu0 %327 }
 0x48f   :  { %v330_v53 = vadd.f32 %v328_v52, %v320_v51 }
 0x491   :  { %975 = vtanh.f32 %v330_v53 }
 0x49e   :  { %v976_v54 = vpop.eup %975 }
 0x49f   :  { %333 = vrot.lane.b32.xlu1 %v976_v54, %s1054_s28 }
 0x511   :  { %v334_v55 = vpop.permute.xlu1 %333 }
 0x512   :  { %v1137_v56 = vmul.f32 %v974_v48, %v334_v55 }
 0x514   :  { %v343_v57 = vpack.c.bf16 %v1137_v56, %v1137_v56 }
 0x516   :  { %345 = vrot.lane.b32.xlu0 %v343_v57, %s1055_s29 }
 0x588   :  { %v346_v58 = vpop.permute.xlu0 %345 }
 0x589   :  { %917 = vmatmul.mubr.msk.bf16.vlgmr.msra.gmra.mxu1 %vm185_vm3, %v346_v58 }
 0x58a   :  { %927 = vmatpush3.bf16.msra.mxu1 %v1099_v5  ;;  %928 = vmatprep.mubr.msk.bf16.mxu1 %vm1051_vm1, %v1050_v0 }
 0x58b   :  { %938 = vmatprep.subr.bf16.mxu1 %v1050_v0 }
 0x649   :  { %v384_v60 = vpop.f32.mrf.mxu1 }
 0x64a   :  { %v390_v61 = vadd.f32 %v384_v60, %v342_v59 }
 0x64b   :  { %v918_v62 = vpop.f32.mrf.mxu1 }
 0x64c   :  { %977 = vtanh.f32 %v390_v61  ;;  %v858_v3 = vmul.f32 -1.442695, %v390_v61  ;;  %v576_v62 = vld [vmem:[#allocation2 + $0xa] sm:$0x3] }
 0x64d   :  { %v387_v63 = vpop.f32.mrf.mxu1 }
 0x64e   :  { %979 = vpow2.f32 %v858_v3 }
 0x64f   :  { %v919_v1 = vpop.f32.mrf.mxu1 }
 0x659   :  { %v978_v2 = vpop.eup %977 }
 0x65a   :  { %400 = vrot.lane.b32.xlu1 %v978_v2, %s1052_s27 }
 0x65b   :  { %v980_v4 = vpop.eup %979 }
 0x65c   :  { %v394_v6 = vadd.f32 1.0, %v980_v4 }
 0x65e   :  { %981 = vrcp.f32 %v394_v6 }
 0x66b   :  { %v982_v7 = vpop.eup %981 }
 0x66c   :  { %v398_v10 = vmul.f32 %v982_v7, %v330_v53 }
 0x6cc   :  { %v401_v8 = vpop.permute.xlu1 %400 }
 0x6cd   :  { %v403_v9 = vmul.f32 %v982_v7, %v401_v8 }
 0x6cf   :  { %405 = vrot.lane.b32.xlu0 %v403_v9, %s1053_s3 }
 0x741   :  { %v406_v11 = vpop.permute.xlu0 %405 }
 0x742   :  { %v408_v12 = vadd.f32 %v406_v11, %v398_v10 }
 0x744   :  { %983 = vtanh.f32 %v408_v12 }
 0x751   :  { %v984_v13 = vpop.eup %983 }
 0x752   :  { %411 = vrot.lane.b32.xlu1 %v984_v13, %s1054_s28 }
 0x7c4   :  { %v412_v14 = vpop.permute.xlu1 %411 }
 0x7c5   :  { %v1150_v15 = vmul.f32 %v982_v7, %v412_v14 }
 0x7c7   :  { %v421_v16 = vpack.c.bf16 %v1150_v15, %v1150_v15 }
 0x7c9   :  { %423 = vrot.lane.b32.xlu0 %v421_v16, %s1055_s29 }
 0x83b   :  { %v424_v17 = vpop.permute.xlu0 %423 }
 0x83c   :  { %923 = vmatmul.mubr.msk.bf16.vlgmr.msra.gmra.mxu0 %vm185_vm3, %v424_v17 }
 0x83d   :  { %933 = vmatpush3.bf16.msra.mxu0 %v1099_v5  ;;  %934 = vmatprep.mubr.msk.bf16.mxu0 %vm1051_vm1, %v1050_v0 }
 0x83e   :  { %944 = vmatprep.subr.bf16.mxu0 %v1050_v0 }
 0x8fc   :  { %v462_v19 = vpop.f32.mrf.mxu0 }
 0x8fd   :  { %v468_v20 = vadd.f32 %v462_v19, %v420_v18 }
 0x8fe   :  { %v924_v21 = vpop.f32.mrf.mxu0 }
 0x8ff   :  { %985 = vtanh.f32 %v468_v20  ;;  %v860_v25 = vmul.f32 -1.442695, %v468_v20  ;;  %v654_v20 = vld [vmem:[#allocation2 + $0xc] sm:$0x3] }
 0x900   :  { %v465_v22 = vpop.f32.mrf.mxu0 }
 0x901   :  { %987 = vpow2.f32 %v860_v25 }
 0x902   :  { %v925_v23 = vpop.f32.mrf.mxu0 }
 0x90c   :  { %v986_v24 = vpop.eup %985 }
 0x90d   :  { %478 = vrot.lane.b32.xlu1 %v986_v24, %s1052_s27 }
 0x90e   :  { %v988_v26 = vpop.eup %987 }
 0x90f   :  { %v472_v27 = vadd.f32 1.0, %v988_v26 }
 0x911   :  { %989 = vrcp.f32 %v472_v27 }
 0x91e   :  { %v990_v28 = vpop.eup %989 }
 0x91f   :  { %v476_v31 = vmul.f32 %v990_v28, %v408_v12 }
 0x97f   :  { %v479_v29 = vpop.permute.xlu1 %478 }
 0x980   :  { %v481_v30 = vmul.f32 %v990_v28, %v479_v29 }
 0x982   :  { %483 = vrot.lane.b32.xlu0 %v481_v30, %s1053_s3 }
 0x9f4   :  { %v484_v32 = vpop.permute.xlu0 %483 }
 0x9f5   :  { %v486_v33 = vadd.f32 %v484_v32, %v476_v31 }
 0x9f7   :  { %991 = vtanh.f32 %v486_v33 }
 0xa04   :  { %v992_v34 = vpop.eup %991 }
 0xa05   :  { %489 = vrot.lane.b32.xlu1 %v992_v34, %s1054_s28 }
 0xa77   :  { %v490_v36 = vpop.permute.xlu1 %489 }
 0xa78   :  { %v1163_v37 = vmul.f32 %v990_v28, %v490_v36 }
 0xa7a   :  { %v499_v38 = vpack.c.bf16 %v1163_v37, %v1163_v37 }
 0xa7c   :  { %501 = vrot.lane.b32.xlu0 %v499_v38, %s1055_s29 }
 0xaee   :  { %v502_v39 = vpop.permute.xlu0 %501 }
 0xaef   :  { %929 = vmatmul.mubr.msk.bf16.vlgmr.msra.gmra.mxu1 %vm185_vm3, %v502_v39 }
 0xaf0   :  { %939 = vmatpush3.bf16.msra.mxu1 %v1099_v5  ;;  %940 = vmatprep.mubr.msk.bf16.mxu1 %vm1051_vm1, %v1050_v0 }
 0xbaf   :  { %v540_v41 = vpop.f32.mrf.mxu1 }
 0xbb0   :  { %v546_v42 = vadd.f32 %v540_v41, %v498_v40 }
 0xbb1   :  { %v930_v43 = vpop.f32.mrf.mxu1 }
 0xbb2   :  { %993 = vtanh.f32 %v546_v42  ;;  %v862_v47 = vmul.f32 -1.442695, %v546_v42  ;;  %v732_v43 = vld [vmem:[#allocation2 + $0xe] sm:$0x3] }
 0xbb3   :  { %v543_v44 = vpop.f32.mrf.mxu1 }
 0xbb4   :  { %995 = vpow2.f32 %v862_v47 }
 0xbb5   :  { %v931_v45 = vpop.f32.mrf.mxu1 }
 0xbbf   :  { %v994_v46 = vpop.eup %993 }
 0xbc0   :  { %556 = vrot.lane.b32.xlu1 %v994_v46, %s1052_s27 }
 0xbc1   :  { %v996_v48 = vpop.eup %995 }
 0xbc2   :  { %v550_v49 = vadd.f32 1.0, %v996_v48 }
 0xbc4   :  { %997 = vrcp.f32 %v550_v49 }
 0xbd1   :  { %v998_v50 = vpop.eup %997 }
 0xbd2   :  { %v554_v53 = vmul.f32 %v998_v50, %v486_v33 }
 0xc32   :  { %v557_v51 = vpop.permute.xlu1 %556 }
 0xc33   :  { %v559_v52 = vmul.f32 %v998_v50, %v557_v51 }
 0xc35   :  { %561 = vrot.lane.b32.xlu0 %v559_v52, %s1053_s3 }
 0xca7   :  { %v562_v54 = vpop.permute.xlu0 %561 }
 0xca8   :  { %v564_v55 = vadd.f32 %v562_v54, %v554_v53 }
 0xcaa   :  { %999 = vtanh.f32 %v564_v55 }
 0xcb7   :  { %v1000_v57 = vpop.eup %999 }
 0xcb8   :  { %567 = vrot.lane.b32.xlu1 %v1000_v57, %s1054_s28 }
 0xd2a   :  { %v568_v58 = vpop.permute.xlu1 %567 }
 0xd2b   :  { %v1175_v59 = vmul.f32 %v998_v50, %v568_v58 }
 0xd2d   :  { %v577_v60 = vpack.c.bf16 %v1175_v59, %v1175_v59 }
 0xd2f   :  { %579 = vrot.lane.b32.xlu0 %v577_v60, %s1055_s29 }
 0xda1   :  { %v580_v61 = vpop.permute.xlu0 %579 }
 0xda2   :  { %935 = vmatmul.mubr.msk.bf16.vlgmr.msra.gmra.mxu0 %vm185_vm3, %v580_v61 }
 0xda3   :  { %945 = vmatpush3.bf16.msra.mxu0 %v1099_v5  ;;  %946 = vmatprep.mubr.msk.bf16.mxu0 %vm1051_vm1, %v1050_v0 }
 0xe62   :  { %v618_v63 = vpop.f32.mrf.mxu0 }
 0xe63   :  { %v624_v1 = vadd.f32 %v618_v63, %v576_v62 }
 0xe64   :  { %v936_v2 = vpop.f32.mrf.mxu0 }
 0xe65   :  { %1001 = vtanh.f32 %v624_v1  ;;  %v864_v7 = vmul.f32 -1.442695, %v624_v1 }
 0xe66   :  { %v621_v3 = vpop.f32.mrf.mxu0 }
 0xe67   :  { %1003 = vpow2.f32 %v864_v7 }
 0xe68   :  { %v937_v4 = vpop.f32.mrf.mxu0 }
 0xe72   :  { %v1002_v6 = vpop.eup %1001 }
 0xe73   :  { %634 = vrot.lane.b32.xlu1 %v1002_v6, %s1052_s27 }
 0xe74   :  { %v1004_v8 = vpop.eup %1003 }
 0xe75   :  { %v628_v9 = vadd.f32 1.0, %v1004_v8 }
 0xe77   :  { %1005 = vrcp.f32 %v628_v9 }
 0xe84   :  { %v1006_v10 = vpop.eup %1005 }
 0xe85   :  { %v632_v0 = vmul.f32 %v1006_v10, %v564_v55 }
 0xee5   :  { %v635_v5 = vpop.permute.xlu1 %634 }
 0xee6   :  { %v637_v11 = vmul.f32 %v1006_v10, %v635_v5 }
 0xee8   :  { %639 = vrot.lane.b32.xlu0 %v637_v11, %s1053_s3 }
 0xf5a   :  { %v640_v12 = vpop.permute.xlu0 %639 }
 0xf5b   :  { %v642_v13 = vadd.f32 %v640_v12, %v632_v0 }
 0xf5d   :  { %1007 = vtanh.f32 %v642_v13 }
 0xf6a   :  { %v1008_v14 = vpop.eup %1007 }
 0xf6b   :  { %645 = vrot.lane.b32.xlu1 %v1008_v14, %s1054_s28 }
 0xfdd   :  { %v646_v16 = vpop.permute.xlu1 %645 }
 0xfde   :  { %v1187_v17 = vmul.f32 %v1006_v10, %v646_v16 }
 0xfe0   :  { %v655_v18 = vpack.c.bf16 %v1187_v17, %v1187_v17 }
 0xfe2   :  { %657 = vrot.lane.b32.xlu0 %v655_v18, %s1055_s29 }
0x1054   :  { %v658_v19 = vpop.permute.xlu0 %657 }
0x1055   :  { %941 = vmatmul.mubr.msk.bf16.vlgmr.msra.gmra.mxu1 %vm185_vm3, %v658_v19 }
0x1115   :  { %v696_v21 = vpop.f32.mrf.mxu1 }
0x1116   :  { %v702_v22 = vadd.f32 %v696_v21, %v654_v20 }
0x1117   :  { %v942_v23 = vpop.f32.mrf.mxu1 }
0x1118   :  { %1009 = vtanh.f32 %v702_v22  ;;  %v866_v27 = vmul.f32 -1.442695, %v702_v22 }
0x1119   :  { %v699_v24 = vpop.f32.mrf.mxu1 }
0x111a   :  { %1011 = vpow2.f32 %v866_v27 }
0x111b   :  { %v943_v25 = vpop.f32.mrf.mxu1 }
0x1125   :  { %v1010_v26 = vpop.eup %1009 }
0x1126   :  { %712 = vrot.lane.b32.xlu1 %v1010_v26, %s1052_s27 }
0x1127   :  { %v1012_v28 = vpop.eup %1011 }
0x1128   :  { %v706_v29 = vadd.f32 1.0, %v1012_v28 }
0x112a   :  { %1013 = vrcp.f32 %v706_v29 }
0x1137   :  { %v1014_v30 = vpop.eup %1013 }
0x1138   :  { %v710_v33 = vmul.f32 %v1014_v30, %v642_v13 }
0x1198   :  { %v713_v31 = vpop.permute.xlu1 %712 }
0x1199   :  { %v715_v32 = vmul.f32 %v1014_v30, %v713_v31 }
0x119b   :  { %717 = vrot.lane.b32.xlu0 %v715_v32, %s1053_s3 }
0x120d   :  { %v718_v34 = vpop.permute.xlu0 %717 }
0x120e   :  { %v720_v36 = vadd.f32 %v718_v34, %v710_v33 }
0x1210   :  { %1015 = vtanh.f32 %v720_v36 }
0x121d   :  { %v1016_v38 = vpop.eup %1015 }
0x121e   :  { %723 = vrot.lane.b32.xlu1 %v1016_v38, %s1054_s28 }
0x1290   :  { %v724_v39 = vpop.permute.xlu1 %723 }
0x1291   :  { %v726_v40 = vmul.f32 %v1014_v30, %v724_v39 }
0x1293   :  { %v733_v41 = vpack.c.bf16 %v726_v40, %v726_v40 }
0x1295   :  { %735 = vrot.lane.b32.xlu0 %v733_v41, %s1055_s29 }
0x1307   :  { %v736_v42 = vpop.permute.xlu0 %735 }
0x1308   :  { %947 = vmatmul.mubr.msk.bf16.vlgmr.msra.gmra.mxu0 %vm185_vm3, %v736_v42 }
0x13c8   :  { %v774_v44 = vpop.f32.mrf.mxu0 }
0x13c9   :  { %v780_v45 = vadd.f32 %v774_v44, %v732_v43 }
0x13ca   :  { %v948_v46 = vpop.f32.mrf.mxu0 }
0x13cb   :  { %1017 = vtanh.f32 %v780_v45  ;;  %v868_v50 = vmul.f32 -1.442695, %v780_v45 }
0x13cc   :  { %v777_v47 = vpop.f32.mrf.mxu0 }
0x13cd   :  { %1019 = vpow2.f32 %v868_v50 }
0x13ce   :  { %v949_v48 = vpop.f32.mrf.mxu0 }
0x13d8   :  { %v1018_v49 = vpop.eup %1017 }
0x13d9   :  { %790 = vrot.lane.b32.xlu1 %v1018_v49, %s1052_s27 }
0x13da   :  { %v1020_v51 = vpop.eup %1019 }
0x13db   :  { %v784_v52 = vadd.f32 1.0, %v1020_v51 }
0x13dd   :  { %1021 = vrcp.f32 %v784_v52 }
0x13ea   :  { %v1022_v53 = vpop.eup %1021 }
0x13eb   :  { %v788_v57 = vmul.f32 %v1022_v53, %v720_v36 }
0x144b   :  { %v791_v54 = vpop.permute.xlu1 %790 }
0x144c   :  { %v793_v55 = vmul.f32 %v1022_v53, %v791_v54 }
0x144e   :  { %795 = vrot.lane.b32.xlu0 %v793_v55, %s1053_s3 }
0x1452   :  { %259 = vrot.lane.b32.xlu0 %v1124_v35, %s1055_s29 }
0x1456   :  { %416 = vrot.lane.b32.xlu0 %v1150_v15, %s1055_s29 }
0x145a   :  { %572 = vrot.lane.b32.xlu0 %v1175_v59, %s1055_s29 }
0x145e   :  { %728 = vrot.lane.b32.xlu0 %v726_v40, %s1055_s29 }
0x14c0   :  { %v796_v58 = vpop.permute.xlu0 %795 }
0x14c1   :  { %v798_v60 = vadd.f32 %v796_v58, %v788_v57 }
0x14c3   :  { %1023 = vtanh.f32 %v798_v60  ;;  %812 = vrot.lane.b32.xlu0 %v798_v60, %s1056_s30 }
0x14c4   :  { %v260_v61 = vpop.permute.xlu0 %259 }
0x14c5   :  { %263 = vst.msk [vmem:[%s1253_s4] sm:$0x3] %vm170_vm0, %v260_v61 }
0x14c8   :  { %v417_v35 = vpop.permute.xlu0 %416 }
0x14c9   :  { %419 = vst.msk [vmem:[%s1253_s4 + $0x4] sm:$0x3] %vm170_vm0, %v417_v35 }
0x14cc   :  { %v573_v15 = vpop.permute.xlu0 %572 }
0x14cd   :  { %575 = vst.msk [vmem:[%s1253_s4 + $0x8] sm:$0x3] %vm170_vm0, %v573_v15 }
0x14d0   :  { %v1024_v59 = vpop.eup %1023  ;;  %v729_v62 = vpop.permute.xlu0 %728 }
0x14d1   :  { %731 = vst.msk [vmem:[%s1253_s4 + $0xc] sm:$0x3] %vm170_vm0, %v729_v62  ;;  %801 = vrot.lane.b32.xlu1 %v1024_v59, %s1054_s28 }
0x14d5   :  { %338 = vrot.lane.b32.xlu1 %v1137_v56, %s1055_s29 }
0x14d9   :  { %494 = vrot.lane.b32.xlu1 %v1163_v37, %s1055_s29 }
0x14dd   :  { %650 = vrot.lane.b32.xlu1 %v1187_v17, %s1055_s29 }
0x1535   :  { %v813_v63 = vpop.permute.xlu0 %812 }
0x1536   :  { %815 = vst.msk [vmem:[#allocation4] sm:$0x3] %vm170_vm0, %v813_v63 }
0x1543   :  { %v802_v1 = vpop.permute.xlu1 %801 }
0x1544   :  { %v804_v2 = vmul.f32 %v1022_v53, %v802_v1 }
0x1546   :  { %806 = vrot.lane.b32.xlu1 %v804_v2, %s1055_s29 }
0x1547   :  { %v339_v3 = vpop.permute.xlu1 %338 }
0x1548   :  { %341 = vst.msk [vmem:[%s1253_s4 + $0x2] sm:$0x3] %vm170_vm0, %v339_v3 }
0x154b   :  { %v495_v56 = vpop.permute.xlu1 %494 }
0x154c   :  { %497 = vst.msk [vmem:[%s1253_s4 + $0x6] sm:$0x3] %vm170_vm0, %v495_v56 }
0x154f   :  { %v651_v37 = vpop.permute.xlu1 %650 }
0x1550   :  { %653 = vst.msk [vmem:[%s1253_s4 + $0xa] sm:$0x3] %vm170_vm0, %v651_v37 }
0x15b8   :  { %v807_v4 = vpop.permute.xlu1 %806 }
0x15b9   :  { %809 = vst.msk [vmem:[%s1253_s4 + $0xe] sm:$0x3] %vm170_vm0, %v807_v4  ;;  %810 = vst.msk [vmem:[#allocation3] sm:$0x3] %vm170_vm0, %v807_v4 }
0x15ba   :  { %834 = vsyncpa [#allocation6], 1 }

</bundles_post_ra>
